<compile_context>
chip_gen: v7x
topology: tpu7x:2x2x1
jax: 0.10.0
libtpu: 0.0.40
codegen_flags: <defaults>
</compile_context>

<pallas_src>
import functools
import math

import jax
import jax.numpy as jnp
from jax.experimental import pallas as pl
from jax.experimental.pallas import tpu as pltpu

F32 = jnp.float32
BF16 = jnp.bfloat16
_VMEM = pl.BlockSpec(memory_space=pltpu.MemorySpace.VMEM)
VMEM_LIMIT = 32 * 1024 * 1024  # explicit scoped-VMEM budget, safe on v5e/v6e/v7x


def _pick_tile(dim, cap, align):
    """Largest tile t <= cap with dim % t == 0 and t % align == 0; falls back to dim.

    Guarantees the grid divides exactly (no OOB padding in reductions) and that
    the block satisfies the (8,128) rule (either aligned or equal to full dim).
    """
    if dim <= cap:
        return dim
    t = (cap // align) * align
    while t >= align:
        if dim % t == 0:
            return t
        t -= align
    return dim


# ----------------------------------------------------------------------------
# Tiled dense:  (M,K) @ (K,N) + b  [+ activation],  bf16 in / f32 accumulate
# ----------------------------------------------------------------------------
def _dense_kernel(x_ref, w_ref, b_ref, o_ref, acc_ref, *, activation):
    k = pl.program_id(2)

    @pl.when(k == 0)
    def _():
        acc_ref[...] = jnp.zeros_like(acc_ref)

    acc_ref[...] += jnp.dot(x_ref[...], w_ref[...],
                            preferred_element_type=jnp.float32)

    @pl.when(k == pl.num_programs(2) - 1)
    def _():
        y = acc_ref[...] + b_ref[...]
        if activation == "gelu":
            # TODO(synk): exact erf-GELU for bit parity with HF BERT; tanh approx
            # used here (matches previous runnable version, guaranteed lowering).
            y = jax.nn.gelu(y)
        elif activation == "tanh":
            y = jnp.tanh(y)
        o_ref[...] = y.astype(o_ref.dtype)


def pallas_dense(x, w, b, activation=None):
    M, K = x.shape
    N = w.shape[1]
    tm = _pick_tile(M, 256, 8)
    tn = _pick_tile(N, 256, 128)
    tk = _pick_tile(K, 512, 128)
    grid = (M // tm, N // tn, K // tk)
    kernel = functools.partial(_dense_kernel, activation=activation)
    return pl.pallas_call(
        kernel,
        out_shape=jax.ShapeDtypeStruct((M, N), BF16),
        grid_spec=pltpu.PrefetchScalarGridSpec(
            num_scalar_prefetch=0,
            grid=grid,
            in_specs=[
                pl.BlockSpec((tm, tk), lambda i, j, k: (i, k)),
                pl.BlockSpec((tk, tn), lambda i, j, k: (k, j)),
                pl.BlockSpec((1, tn), lambda i, j, k: (0, j)),
            ],
            out_specs=pl.BlockSpec((tm, tn), lambda i, j, k: (i, j)),
            scratch_shapes=[pltpu.VMEM((tm, tn), jnp.float32)],
        ),
        compiler_params=pltpu.CompilerParams(
            dimension_semantics=("parallel", "parallel", "arbitrary"),
            vmem_limit_bytes=VMEM_LIMIT,
        ),
    )(x.astype(BF16), w.astype(BF16), b.reshape(1, N).astype(F32))


# ----------------------------------------------------------------------------
# Row-gridded LayerNorm (optionally fused residual add), f32 math, bf16 out
# ----------------------------------------------------------------------------
def _ln_kernel(x_ref, g_ref, b_ref, o_ref, *, eps):
    x = x_ref[...].astype(jnp.float32)
    mu = jnp.mean(x, axis=-1, keepdims=True)
    var = jnp.mean((x - mu) ** 2, axis=-1, keepdims=True)
    inv = jax.lax.rsqrt(var + eps)
    o_ref[...] = ((x - mu) * inv * g_ref[...] + b_ref[...]).astype(o_ref.dtype)


def _add_ln_kernel(x_ref, r_ref, g_ref, b_ref, o_ref, *, eps):
    x = x_ref[...].astype(jnp.float32) + r_ref[...].astype(jnp.float32)
    mu = jnp.mean(x, axis=-1, keepdims=True)
    var = jnp.mean((x - mu) ** 2, axis=-1, keepdims=True)
    inv = jax.lax.rsqrt(var + eps)
    o_ref[...] = ((x - mu) * inv * g_ref[...] + b_ref[...]).astype(o_ref.dtype)


def pallas_add_layernorm(x, residual, gamma, beta, eps=1e-12):
    M, H = x.shape
    tm = _pick_tile(M, 512, 8)
    grid = (M // tm,)
    row_spec = pl.BlockSpec((tm, H), lambda i: (i, 0))
    vec_spec = pl.BlockSpec((1, H), lambda i: (0, 0))
    cp = pltpu.CompilerParams(dimension_semantics=("parallel",),
                              vmem_limit_bytes=VMEM_LIMIT)
    g = gamma.reshape(1, H).astype(F32)
    b = beta.reshape(1, H).astype(F32)
    if residual is None:
        return pl.pallas_call(
            functools.partial(_ln_kernel, eps=eps),
            out_shape=jax.ShapeDtypeStruct((M, H), BF16),
            grid_spec=pltpu.PrefetchScalarGridSpec(
                num_scalar_prefetch=0, grid=grid,
                in_specs=[row_spec, vec_spec, vec_spec],
                out_specs=row_spec),
            compiler_params=cp,
        )(x, g, b)
    return pl.pallas_call(
        functools.partial(_add_ln_kernel, eps=eps),
        out_shape=jax.ShapeDtypeStruct((M, H), BF16),
        grid_spec=pltpu.PrefetchScalarGridSpec(
            num_scalar_prefetch=0, grid=grid,
            in_specs=[row_spec, row_spec, vec_spec, vec_spec],
            out_specs=row_spec),
        compiler_params=cp,
    )(x, residual, g, b)


# ----------------------------------------------------------------------------
# Flash-style attention: grid (B*heads, q_tiles, kv_tiles), online softmax
# ----------------------------------------------------------------------------
def _flash_attn_kernel(q_ref, k_ref, v_ref, bias_ref, o_ref,
                       m_sc, l_sc, acc_sc, *, scale):
    ki = pl.program_id(2)

    @pl.when(ki == 0)
    def _():
        m_sc[...] = jnp.full_like(m_sc, -jnp.inf)
        l_sc[...] = jnp.zeros_like(l_sc)
        acc_sc[...] = jnp.zeros_like(acc_sc)

    q = q_ref[0]                                   # (tq, Dh) bf16
    k = k_ref[0]                                   # (tkv, Dh) bf16
    v = v_ref[0]                                   # (tkv, Dh) bf16

    s = jax.lax.dot_general(q, k, (((1,), (1,)), ((), ())),
                            preferred_element_type=jnp.float32) * scale
    s = s + bias_ref[0]                            # additive mask bias (1, tkv)

    m_prev = m_sc[...]
    m_new = jnp.maximum(m_prev, jnp.max(s, axis=-1, keepdims=True))
    alpha = jnp.exp(m_prev - m_new)
    p = jnp.exp(s - m_new)
    l_sc[...] = alpha * l_sc[...] + jnp.sum(p, axis=-1, keepdims=True)
    acc_sc[...] = alpha * acc_sc[...] + jnp.dot(
        p.astype(v.dtype), v, preferred_element_type=jnp.float32)
    m_sc[...] = m_new

    @pl.when(ki == pl.num_programs(2) - 1)
    def _():
        inv = pl.reciprocal(l_sc[...], approx=True)
        o_ref[0] = (acc_sc[...] * inv).astype(o_ref.dtype)


def pallas_flash_attention(q, k, v, bias):
    """q,k,v:(B*heads, S, Dh) bf16; bias:(B*heads, 1, S) f32 additive mask."""
    BH, S, Dh = q.shape
    tq = _pick_tile(S, 256, 8)
    tkv = _pick_tile(S, 256, 128)
    grid = (BH, S // tq, S // tkv)
    scale = 1.0 / math.sqrt(Dh)
    return pl.pallas_call(
        functools.partial(_flash_attn_kernel, scale=scale),
        out_shape=jax.ShapeDtypeStruct((BH, S, Dh), BF16),
        grid_spec=pltpu.PrefetchScalarGridSpec(
            num_scalar_prefetch=0,
            grid=grid,
            in_specs=[
                pl.BlockSpec((1, tq, Dh), lambda b, qi, ki: (b, qi, 0)),
                pl.BlockSpec((1, tkv, Dh), lambda b, qi, ki: (b, ki, 0)),
                pl.BlockSpec((1, tkv, Dh), lambda b, qi, ki: (b, ki, 0)),
                pl.BlockSpec((1, 1, tkv), lambda b, qi, ki: (b, 0, ki)),
            ],
            out_specs=pl.BlockSpec((1, tq, Dh), lambda b, qi, ki: (b, qi, 0)),
            scratch_shapes=[
                pltpu.VMEM((tq, 1), jnp.float32),    # running max
                pltpu.VMEM((tq, 1), jnp.float32),    # running denom
                pltpu.VMEM((tq, Dh), jnp.float32),   # running acc
            ],
        ),
        compiler_params=pltpu.CompilerParams(
            dimension_semantics=("parallel", "parallel", "arbitrary"),
            vmem_limit_bytes=VMEM_LIMIT,
        ),
    )(q.astype(BF16), k.astype(BF16), v.astype(BF16), bias.astype(F32))


# ----------------------------------------------------------------------------
# Fused BERT pooler + linear decoder head (tiny: one launch, f32)
# ----------------------------------------------------------------------------
def _pooler_cls_kernel(cls_ref, wp_ref, bp_ref, wc_ref, bc_ref, o_ref):
    x = cls_ref[...].astype(jnp.float32)
    pooled = jnp.tanh(
        jnp.dot(x, wp_ref[...], preferred_element_type=jnp.float32) + bp_ref[...])
    o_ref[...] = (jnp.dot(pooled, wc_ref[...], preferred_element_type=jnp.float32)
                  + bc_ref[...]).astype(o_ref.dtype)


def pallas_pooler_classifier(cls, wp, bp, wc, bc):
    B, H = cls.shape
    L = wc.shape[1]
    return pl.pallas_call(
        _pooler_cls_kernel,
        out_shape=jax.ShapeDtypeStruct((B, L), F32),
        in_specs=[_VMEM] * 5,
        out_specs=_VMEM,
        compiler_params=pltpu.CompilerParams(vmem_limit_bytes=VMEM_LIMIT),
    )(cls.astype(F32), wp.astype(F32), bp.reshape(1, H).astype(F32),
      wc.astype(F32), bc.reshape(1, L).astype(F32))


# ----------------------------------------------------------------------------
# Parameter initialization (deterministic, synthetic)
# ----------------------------------------------------------------------------
def init_params(key, vocab, max_pos, hidden, ffn, label_num):
    ks = list(jax.random.split(key, 16))
    n = lambda k, shp: (jax.random.normal(k, shp, dtype=F32) * 0.02)
    p = {
        "word_emb": n(ks[0], (vocab, hidden)),
        "pos_emb": n(ks[1], (max_pos, hidden)),
        "type_emb": n(ks[2], (2, hidden)),
        "ln_emb_g": jnp.ones((hidden,), F32), "ln_emb_b": jnp.zeros((hidden,), F32),
        # fused QKV projection: wq | wk | wv concatenated on the output dim
        "wqkv": jnp.concatenate(
            [n(ks[3], (hidden, hidden)),
             n(ks[4], (hidden, hidden)),
             n(ks[5], (hidden, hidden))], axis=1).astype(BF16),
        "bqkv": jnp.zeros((3 * hidden,), F32),
        "wo": n(ks[6], (hidden, hidden)).astype(BF16), "bo": jnp.zeros((hidden,), F32),
        "ln1_g": jnp.ones((hidden,), F32), "ln1_b": jnp.zeros((hidden,), F32),
        "w1": n(ks[7], (hidden, ffn)).astype(BF16), "b1": jnp.zeros((ffn,), F32),
        "w2": n(ks[8], (ffn, hidden)).astype(BF16), "b2": jnp.zeros((hidden,), F32),
        "ln2_g": jnp.ones((hidden,), F32), "ln2_b": jnp.zeros((hidden,), F32),
        "wp": n(ks[9], (hidden, hidden)), "bp": jnp.zeros((hidden,), F32),
        "wc": n(ks[10], (hidden, label_num)), "bc": jnp.zeros((label_num,), F32),
    }
    return p


# ----------------------------------------------------------------------------
# Text_Model.forward == decoder(encoder(**inputs))
# ----------------------------------------------------------------------------
def text_model_forward(params, input_ids, attention_mask, *, num_heads):
    B, S = input_ids.shape
    H = params["word_emb"].shape[1]
    Dh = H // num_heads
    M = B * S

    # --- BERT_Text_Encoder -------------------------------------------------
    # embeddings (gather is XLA glue; no clean Pallas path for table lookups here)
    emb = (
        params["word_emb"][input_ids]
        + params["pos_emb"][jnp.arange(S)][None, :, :]
        + params["type_emb"][0][None, None, :]
    )
    h = pallas_add_layernorm(emb.reshape(M, H), None,
                             params["ln_emb_g"], params["ln_emb_b"])       # (M,H) bf16

    # fused Q/K/V projection: one kernel, x read once
    qkv = pallas_dense(h, params["wqkv"], params["bqkv"])                  # (M,3H) bf16
    q, k, v = qkv[:, :H], qkv[:, H:2 * H], qkv[:, 2 * H:]

    # TODO(synk): fold head split/merge into BlockSpec index_maps (Dh < 128 makes
    # per-head lane blocks on the (M,H) layout violate the (8,128) rule), so the
    # head transpose stays as XLA layout glue.
    def split_heads(x):  # (M, H) -> (B*heads, S, Dh)
        return (x.reshape(B, S, num_heads, Dh)
                 .transpose(0, 2, 1, 3)
                 .reshape(B * num_heads, S, Dh))

    qh, kh, vh = split_heads(q), split_heads(k), split_heads(v)

    # additive mask bias precomputed once (select instead of (1-m)*-1e9 arithmetic)
    bias = jnp.where(attention_mask > 0, 0.0, -1e9).astype(F32)            # (B, S)
    bias_bh = jnp.broadcast_to(
        bias[:, None, :], (B, num_heads, S)).reshape(B * num_heads, 1, S)

    attn = pallas_flash_attention(qh, kh, vh, bias_bh)                     # (BH,S,Dh)
    attn = (attn.reshape(B, num_heads, S, Dh)
                .transpose(0, 2, 1, 3).reshape(M, H))

    attn_out = pallas_dense(attn, params["wo"], params["bo"])
    h = pallas_add_layernorm(attn_out, h, params["ln1_g"], params["ln1_b"])  # fused +LN

    # feed-forward
    ffn = pallas_dense(h, params["w1"], params["b1"], activation="gelu")
    ffn = pallas_dense(ffn, params["w2"], params["b2"])
    h = pallas_add_layernorm(ffn, h, params["ln2_g"], params["ln2_b"])       # fused +LN

    # BERT pooler + Text_Decoder classifier, fused into one tiny kernel
    cls = h.reshape(B, S, H)[:, 0, :]                                        # (B, H)
    logits = pallas_pooler_classifier(cls, params["wp"], params["bp"],
                                      params["wc"], params["bc"])            # (B, L) f32
    return logits


# ----------------------------------------------------------------------------
if __name__ == "__main__":
    B, S, H, HEADS, FFN = 2, 8, 32, 2, 64
    VOCAB, MAX_POS, LABEL_NUM = 100, 64, 4

    root = jax.random.PRNGKey(0)
    k_param, k_ids = jax.random.split(root)

    params = init_params(k_param, VOCAB, MAX_POS, H, FFN, LABEL_NUM)
    input_ids = jax.random.randint(k_ids, (B, S), 0, VOCAB, dtype=jnp.int32)
    attention_mask = jnp.ones((B, S), dtype=jnp.int32)

    fwd = jax.jit(functools.partial(text_model_forward, num_heads=HEADS))
    logits = fwd(params, input_ids, attention_mask)
    jax.block_until_ready(logits)
    assert logits.shape == (B, LABEL_NUM) and logits.dtype == F32
    print("KERNEL_OK")
</pallas_src>

<mosaic_0001>
module attributes {stable_mosaic.version = 11 : i64} {
  func.func @_ln_kernel(%arg0: i32, %arg1: memref<16x32xf32, #tpu.memory_space<vmem>>, %arg2: memref<1x32xf32, #tpu.memory_space<vmem>>, %arg3: memref<1x32xf32, #tpu.memory_space<vmem>>, %arg4: memref<16x32xbf16, #tpu.memory_space<vmem>>) attributes {dimension_semantics = [#tpu.dimension_semantics<parallel>], iteration_bounds = array<i64: 1>, scalar_prefetch = 0 : i64, scratch_operands = 0 : i64, tpu.core_type = #tpu.core_type<tc>, window_params = [{transform_indices = @transform_0, window_bounds = array<i64: 16, 32>}, {pipeline_mode = #tpu.pipeline_mode<synchronous>, transform_indices = @transform_1, window_bounds = array<i64: 1, 32>}, {pipeline_mode = #tpu.pipeline_mode<synchronous>, transform_indices = @transform_2, window_bounds = array<i64: 1, 32>}, {transform_indices = @transform_3, window_bounds = array<i64: 16, 32>}]} {
    %c0 = arith.constant 0 : index
    %c0_0 = arith.constant 0 : index
    %0 = vector.load %arg1[%c0, %c0_0] : memref<16x32xf32, #tpu.memory_space<vmem>>, vector<16x32xf32>
    %cst = arith.constant dense<0.000000e+00> : vector<16xf32>
    %1 = vector.multi_reduction <add>, %0, %cst [1] : vector<16x32xf32> to vector<16xf32>
    %2 = vector.shape_cast %1 : vector<16xf32> to vector<16x1xf32>
    %cst_1 = arith.constant 3.200000e+01 : f32
    %3 = vector.broadcast %cst_1 : f32 to vector<16x1xf32>
    %4 = arith.divf %2, %3 : vector<16x1xf32>
    %5 = vector.broadcast %4 : vector<16x1xf32> to vector<16x32xf32>
    %6 = arith.subf %0, %5 : vector<16x32xf32>
    %7 = arith.mulf %6, %6 : vector<16x32xf32>
    %cst_2 = arith.constant dense<0.000000e+00> : vector<16xf32>
    %8 = vector.multi_reduction <add>, %7, %cst_2 [1] : vector<16x32xf32> to vector<16xf32>
    %9 = vector.shape_cast %8 : vector<16xf32> to vector<16x1xf32>
    %cst_3 = arith.constant 3.200000e+01 : f32
    %10 = vector.broadcast %cst_3 : f32 to vector<16x1xf32>
    %11 = arith.divf %9, %10 : vector<16x1xf32>
    %cst_4 = arith.constant 9.99999996E-13 : f32
    %12 = vector.broadcast %cst_4 : f32 to vector<16x1xf32>
    %13 = arith.addf %11, %12 : vector<16x1xf32>
    %14 = math.rsqrt %13 : vector<16x1xf32>
    %15 = vector.broadcast %4 : vector<16x1xf32> to vector<16x32xf32>
    %16 = arith.subf %0, %15 : vector<16x32xf32>
    %17 = vector.broadcast %14 : vector<16x1xf32> to vector<16x32xf32>
    %18 = arith.mulf %16, %17 : vector<16x32xf32>
    %c0_5 = arith.constant 0 : index
    %c0_6 = arith.constant 0 : index
    %19 = vector.load %arg2[%c0_5, %c0_6] : memref<1x32xf32, #tpu.memory_space<vmem>>, vector<1x32xf32>
    %20 = vector.broadcast %19 : vector<1x32xf32> to vector<16x32xf32>
    %21 = arith.mulf %18, %20 : vector<16x32xf32>
    %c0_7 = arith.constant 0 : index
    %c0_8 = arith.constant 0 : index
    %22 = vector.load %arg3[%c0_7, %c0_8] : memref<1x32xf32, #tpu.memory_space<vmem>>, vector<1x32xf32>
    %23 = vector.broadcast %22 : vector<1x32xf32> to vector<16x32xf32>
    %24 = arith.addf %21, %23 : vector<16x32xf32>
    %25 = arith.truncf %24 : vector<16x32xf32> to vector<16x32xbf16>
    %c0_9 = arith.constant 0 : index
    %c0_10 = arith.constant 0 : index
    %26 = vector.load %arg4[%c0_9, %c0_10] : memref<16x32xbf16, #tpu.memory_space<vmem>>, vector<16x32xbf16>
    tpu.vector_store %arg4[%c0_9, %c0_10], %25 {strides = array<i32>} : memref<16x32xbf16, #tpu.memory_space<vmem>>, vector<16x32xbf16>,
    return
  }
  func.func @transform_0(%arg0: i32) -> (i32, i32) {
    %c0_i32 = arith.constant 0 : i32
    %c0_i32_0 = arith.constant 0 : i32
    return %arg0, %c0_i32 : i32, i32
  }
  func.func @transform_1(%arg0: i32) -> (i32, i32) {
    %c0_i32 = arith.constant 0 : i32
    %c0_i32_0 = arith.constant 0 : i32
    %c0_i32_1 = arith.constant 0 : i32
    return %c0_i32, %c0_i32_0 : i32, i32
  }
  func.func @transform_2(%arg0: i32) -> (i32, i32) {
    %c0_i32 = arith.constant 0 : i32
    %c0_i32_0 = arith.constant 0 : i32
    %c0_i32_1 = arith.constant 0 : i32
    return %c0_i32, %c0_i32_0 : i32, i32
  }
  func.func @transform_3(%arg0: i32) -> (i32, i32) {
    %c0_i32 = arith.constant 0 : i32
    %c0_i32_0 = arith.constant 0 : i32
    return %arg0, %c0_i32 : i32, i32
  }
}

module attributes {stable_mosaic.version = 11 : i64} {
  func.func @_dense_kernel(%arg0: i32, %arg1: i32, %arg2: i32, %arg3: memref<16x32xbf16, #tpu.memory_space<vmem>>, %arg4: memref<32x96xbf16, #tpu.memory_space<vmem>>, %arg5: memref<1x96xf32, #tpu.memory_space<vmem>>, %arg6: memref<16x96xbf16, #tpu.memory_space<vmem>>, %arg7: memref<16x96xf32, #tpu.memory_space<vmem>>) attributes {dimension_semantics = [#tpu.dimension_semantics<parallel>, #tpu.dimension_semantics<parallel>, #tpu.dimension_semantics<arbitrary>], iteration_bounds = array<i64: 1, 1, 1>, scalar_prefetch = 0 : i64, scratch_operands = 1 : i64, tpu.core_type = #tpu.core_type<tc>, window_params = [{transform_indices = @transform_0, window_bounds = array<i64: 16, 32>}, {transform_indices = @transform_1, window_bounds = array<i64: 32, 96>}, {transform_indices = @transform_2, window_bounds = array<i64: 1, 96>}, {transform_indices = @transform_3, window_bounds = array<i64: 16, 96>}]} {
    %c0_i32 = arith.constant 0 : i32
    %0 = arith.cmpi eq, %arg2, %c0_i32 : i32
    %1 = arith.extui %0 : i1 to i32
    %c0_i32_0 = arith.constant 0 : i32
    %2 = arith.cmpi ne, %1, %c0_i32_0 : i32
    scf.if %2 {
      %cst_10 = arith.constant 0.000000e+00 : f32
      %12 = vector.broadcast %cst_10 : f32 to vector<16x96xf32>
      %c0_11 = arith.constant 0 : index
      %c0_12 = arith.constant 0 : index
      %13 = vector.load %arg7[%c0_11, %c0_12] : memref<16x96xf32, #tpu.memory_space<vmem>>, vector<16x96xf32>
      tpu.vector_store %arg7[%c0_11, %c0_12], %12 {strides = array<i32>} : memref<16x96xf32, #tpu.memory_space<vmem>>, vector<16x96xf32>,
    } else {
    }
    %c0 = arith.constant 0 : index
    %c0_1 = arith.constant 0 : index
    %3 = vector.load %arg7[%c0, %c0_1] : memref<16x96xf32, #tpu.memory_space<vmem>>, vector<16x96xf32>
    %c0_2 = arith.constant 0 : index
    %c0_3 = arith.constant 0 : index
    %4 = vector.load %arg3[%c0_2, %c0_3] : memref<16x32xbf16, #tpu.memory_space<vmem>>, vector<16x32xbf16>
    %c0_4 = arith.constant 0 : index
    %c0_5 = arith.constant 0 : index
    %5 = vector.load %arg4[%c0_4, %c0_5] : memref<32x96xbf16, #tpu.memory_space<vmem>>, vector<32x96xbf16>
    %cst = arith.constant dense<0.000000e+00> : vector<16x96xf32>
    %6 = tpu.matmul %4, %5, %cst {dimension_numbers = #tpu.dot_dimension_numbers<[1], [0], [0], [1], [0, 0, 1, 1], [], []>} : vector<16x32xbf16>, vector<32x96xbf16>, vector<16x96xf32> -> vector<16x96xf32>
    %7 = arith.addf %3, %6 : vector<16x96xf32>
    %c0_6 = arith.constant 0 : index
    %c0_7 = arith.constant 0 : index
    %8 = vector.load %arg7[%c0_6, %c0_7] : memref<16x96xf32, #tpu.memory_space<vmem>>, vector<16x96xf32>
    tpu.vector_store %arg7[%c0_6, %c0_7], %7 {strides = array<i32>} : memref<16x96xf32, #tpu.memory_space<vmem>>, vector<16x96xf32>,
    %c0_i32_8 = arith.constant 0 : i32
    %9 = arith.cmpi eq, %arg2, %c0_i32_8 : i32
    %10 = arith.extui %9 : i1 to i32
    %c0_i32_9 = arith.constant 0 : i32
    %11 = arith.cmpi ne, %10, %c0_i32_9 : i32
    scf.if %11 {
      %c0_10 = arith.constant 0 : index
      %c0_11 = arith.constant 0 : index
      %12 = vector.load %arg7[%c0_10, %c0_11] : memref<16x96xf32, #tpu.memory_space<vmem>>, vector<16x96xf32>
      %c0_12 = arith.constant 0 : index
      %c0_13 = arith.constant 0 : index
      %13 = vector.load %arg5[%c0_12, %c0_13] : memref<1x96xf32, #tpu.memory_space<vmem>>, vector<1x96xf32>
      %14 = vector.broadcast %13 : vector<1x96xf32> to vector<16x96xf32>
      %15 = arith.addf %12, %14 : vector<16x96xf32>
      %16 = arith.truncf %15 : vector<16x96xf32> to vector<16x96xbf16>
      %c0_14 = arith.constant 0 : index
      %c0_15 = arith.constant 0 : index
      %17 = vector.load %arg6[%c0_14, %c0_15] : memref<16x96xbf16, #tpu.memory_space<vmem>>, vector<16x96xbf16>
      tpu.vector_store %arg6[%c0_14, %c0_15], %16 {strides = array<i32>} : memref<16x96xbf16, #tpu.memory_space<vmem>>, vector<16x96xbf16>,
    } else {
    }
    return
  }
  func.func @transform_0(%arg0: i32, %arg1: i32, %arg2: i32) -> (i32, i32) {
    %c0_i32 = arith.constant 0 : i32
    return %arg0, %arg2 : i32, i32
  }
  func.func @transform_1(%arg0: i32, %arg1: i32, %arg2: i32) -> (i32, i32) {
    %c0_i32 = arith.constant 0 : i32
    return %arg2, %arg1 : i32, i32
  }
  func.func @transform_2(%arg0: i32, %arg1: i32, %arg2: i32) -> (i32, i32) {
    %c0_i32 = arith.constant 0 : i32
    %c0_i32_0 = arith.constant 0 : i32
    return %c0_i32, %arg1 : i32, i32
  }
  func.func @transform_3(%arg0: i32, %arg1: i32, %arg2: i32) -> (i32, i32) {
    %c0_i32 = arith.constant 0 : i32
    return %arg0, %arg1 : i32, i32
  }
}

module attributes {stable_mosaic.version = 11 : i64} {
  func.func @_flash_attn_kernel(%arg0: i32, %arg1: i32, %arg2: i32, %arg3: memref<1x8x16xbf16, #tpu.memory_space<vmem>>, %arg4: memref<1x8x16xbf16, #tpu.memory_space<vmem>>, %arg5: memref<1x8x16xbf16, #tpu.memory_space<vmem>>, %arg6: memref<1x1x8xf32, #tpu.memory_space<vmem>>, %arg7: memref<1x8x16xbf16, #tpu.memory_space<vmem>>, %arg8: memref<8x1xf32, #tpu.memory_space<vmem>>, %arg9: memref<8x1xf32, #tpu.memory_space<vmem>>, %arg10: memref<8x16xf32, #tpu.memory_space<vmem>>) attributes {dimension_semantics = [#tpu.dimension_semantics<parallel>, #tpu.dimension_semantics<parallel>, #tpu.dimension_semantics<arbitrary>], iteration_bounds = array<i64: 4, 1, 1>, scalar_prefetch = 0 : i64, scratch_operands = 3 : i64, tpu.core_type = #tpu.core_type<tc>, window_params = [{transform_indices = @transform_0, window_bounds = array<i64: 1, 8, 16>}, {transform_indices = @transform_1, window_bounds = array<i64: 1, 8, 16>}, {transform_indices = @transform_2, window_bounds = array<i64: 1, 8, 16>}, {transform_indices = @transform_3, window_bounds = array<i64: 1, 1, 8>}, {transform_indices = @transform_4, window_bounds = array<i64: 1, 8, 16>}]} {
    %c0_i32 = arith.constant 0 : i32
    %0 = arith.cmpi eq, %arg2, %c0_i32 : i32
    %1 = arith.extui %0 : i1 to i32
    %c0_i32_0 = arith.constant 0 : i32
    %2 = arith.cmpi ne, %1, %c0_i32_0 : i32
    scf.if %2 {
      %cst_30 = arith.constant 0xFF800000 : f32
      %42 = vector.broadcast %cst_30 : f32 to vector<8x1xf32>
      %c0_31 = arith.constant 0 : index
      %c0_32 = arith.constant 0 : index
      %43 = vector.load %arg8[%c0_31, %c0_32] : memref<8x1xf32, #tpu.memory_space<vmem>>, vector<8x1xf32>
      tpu.vector_store %arg8[%c0_31, %c0_32], %42 {strides = array<i32>} : memref<8x1xf32, #tpu.memory_space<vmem>>, vector<8x1xf32>,
      %cst_33 = arith.constant 0.000000e+00 : f32
      %44 = vector.broadcast %cst_33 : f32 to vector<8x1xf32>
      %c0_34 = arith.constant 0 : index
      %c0_35 = arith.constant 0 : index
      %45 = vector.load %arg9[%c0_34, %c0_35] : memref<8x1xf32, #tpu.memory_space<vmem>>, vector<8x1xf32>
      tpu.vector_store %arg9[%c0_34, %c0_35], %44 {strides = array<i32>} : memref<8x1xf32, #tpu.memory_space<vmem>>, vector<8x1xf32>,
      %cst_36 = arith.constant 0.000000e+00 : f32
      %46 = vector.broadcast %cst_36 : f32 to vector<8x16xf32>
      %c0_37 = arith.constant 0 : index
      %c0_38 = arith.constant 0 : index
      %47 = vector.load %arg10[%c0_37, %c0_38] : memref<8x16xf32, #tpu.memory_space<vmem>>, vector<8x16xf32>
      tpu.vector_store %arg10[%c0_37, %c0_38], %46 {strides = array<i32>} : memref<8x16xf32, #tpu.memory_space<vmem>>, vector<8x16xf32>,
    } else {
    }
    %c0 = arith.constant 0 : index
    %c0_1 = arith.constant 0 : index
    %c0_2 = arith.constant 0 : index
    %3 = vector.load %arg3[%c0, %c0_1, %c0_2] : memref<1x8x16xbf16, #tpu.memory_space<vmem>>, vector<1x8x16xbf16>
    %4 = vector.shape_cast %3 : vector<1x8x16xbf16> to vector<8x16xbf16>
    %c0_3 = arith.constant 0 : index
    %c0_4 = arith.constant 0 : index
    %c0_5 = arith.constant 0 : index
    %5 = vector.load %arg4[%c0_3, %c0_4, %c0_5] : memref<1x8x16xbf16, #tpu.memory_space<vmem>>, vector<1x8x16xbf16>
    %6 = vector.shape_cast %5 : vector<1x8x16xbf16> to vector<8x16xbf16>
    %c0_6 = arith.constant 0 : index
    %c0_7 = arith.constant 0 : index
    %c0_8 = arith.constant 0 : index
    %7 = vector.load %arg5[%c0_6, %c0_7, %c0_8] : memref<1x8x16xbf16, #tpu.memory_space<vmem>>, vector<1x8x16xbf16>
    %8 = vector.shape_cast %7 : vector<1x8x16xbf16> to vector<8x16xbf16>
    %cst = arith.constant dense<0.000000e+00> : vector<8x8xf32>
    %9 = tpu.matmul %4, %6, %cst {dimension_numbers = #tpu.dot_dimension_numbers<[1], [1], [0], [0], [0, 0, 1, 0], [], []>} : vector<8x16xbf16>, vector<8x16xbf16>, vector<8x8xf32> -> vector<8x8xf32>
    %cst_9 = arith.constant 2.500000e-01 : f32
    %10 = vector.broadcast %cst_9 : f32 to vector<8x8xf32>
    %11 = arith.mulf %9, %10 : vector<8x8xf32>
    %c0_10 = arith.constant 0 : index
    %c0_11 = arith.constant 0 : index
    %c0_12 = arith.constant 0 : index
    %12 = vector.load %arg6[%c0_10, %c0_11, %c0_12] : memref<1x1x8xf32, #tpu.memory_space<vmem>>, vector<1x1x8xf32>
    %13 = vector.shape_cast %12 : vector<1x1x8xf32> to vector<1x8xf32>
    %14 = vector.broadcast %13 : vector<1x8xf32> to vector<8x8xf32>
    %15 = arith.addf %11, %14 : vector<8x8xf32>
    %c0_13 = arith.constant 0 : index
    %c0_14 = arith.constant 0 : index
    %16 = vector.load %arg8[%c0_13, %c0_14] : memref<8x1xf32, #tpu.memory_space<vmem>>, vector<8x1xf32>
    %cst_15 = arith.constant dense<0xFF800000> : vector<8xf32>
    %17 = vector.multi_reduction <maximumf>, %15, %cst_15 [1] : vector<8x8xf32> to vector<8xf32>
    %18 = vector.shape_cast %17 : vector<8xf32> to vector<8x1xf32>
    %19 = arith.maximumf %16, %18 : vector<8x1xf32>
    %20 = arith.subf %16, %19 : vector<8x1xf32>
    %21 = math.exp %20 : vector<8x1xf32>
    %22 = vector.broadcast %19 : vector<8x1xf32> to vector<8x8xf32>
    %23 = arith.subf %15, %22 : vector<8x8xf32>
    %24 = math.exp %23 : vector<8x8xf32>
    %c0_16 = arith.constant 0 : index
    %c0_17 = arith.constant 0 : index
    %25 = vector.load %arg9[%c0_16, %c0_17] : memref<8x1xf32, #tpu.memory_space<vmem>>, vector<8x1xf32>
    %26 = arith.mulf %21, %25 : vector<8x1xf32>
    %cst_18 = arith.constant dense<0.000000e+00> : vector<8xf32>
    %27 = vector.multi_reduction <add>, %24, %cst_18 [1] : vector<8x8xf32> to vector<8xf32>
    %28 = vector.shape_cast %27 : vector<8xf32> to vector<8x1xf32>
    %29 = arith.addf %26, %28 : vector<8x1xf32>
    %c0_19 = arith.constant 0 : index
    %c0_20 = arith.constant 0 : index
    %30 = vector.load %arg9[%c0_19, %c0_20] : memref<8x1xf32, #tpu.memory_space<vmem>>, vector<8x1xf32>
    tpu.vector_store %arg9[%c0_19, %c0_20], %29 {strides = array<i32>} : memref<8x1xf32, #tpu.memory_space<vmem>>, vector<8x1xf32>,
    %c0_21 = arith.constant 0 : index
    %c0_22 = arith.constant 0 : index
    %31 = vector.load %arg10[%c0_21, %c0_22] : memref<8x16xf32, #tpu.memory_space<vmem>>, vector<8x16xf32>
    %32 = vector.broadcast %21 : vector<8x1xf32> to vector<8x16xf32>
    %33 = arith.mulf %32, %31 : vector<8x16xf32>
    %34 = arith.truncf %24 : vector<8x8xf32> to vector<8x8xbf16>
    %cst_23 = arith.constant dense<0.000000e+00> : vector<8x16xf32>
    %35 = tpu.matmul %34, %8, %cst_23 {dimension_numbers = #tpu.dot_dimension_numbers<[1], [0], [0], [1], [0, 0, 1, 1], [], []>} : vector<8x8xbf16>, vector<8x16xbf16>, vector<8x16xf32> -> vector<8x16xf32>
    %36 = arith.addf %33, %35 : vector<8x16xf32>
    %c0_24 = arith.constant 0 : index
    %c0_25 = arith.constant 0 : index
    %37 = vector.load %arg10[%c0_24, %c0_25] : memref<8x16xf32, #tpu.memory_space<vmem>>, vector<8x16xf32>
    tpu.vector_store %arg10[%c0_24, %c0_25], %36 {strides = array<i32>} : memref<8x16xf32, #tpu.memory_space<vmem>>, vector<8x16xf32>,
    %c0_26 = arith.constant 0 : index
    %c0_27 = arith.constant 0 : index
    %38 = vector.load %arg8[%c0_26, %c0_27] : memref<8x1xf32, #tpu.memory_space<vmem>>, vector<8x1xf32>
    tpu.vector_store %arg8[%c0_26, %c0_27], %19 {strides = array<i32>} : memref<8x1xf32, #tpu.memory_space<vmem>>, vector<8x1xf32>,
    %c0_i32_28 = arith.constant 0 : i32
    %39 = arith.cmpi eq, %arg2, %c0_i32_28 : i32
    %40 = arith.extui %39 : i1 to i32
    %c0_i32_29 = arith.constant 0 : i32
    %41 = arith.cmpi ne, %40, %c0_i32_29 : i32
    scf.if %41 {
      %c0_30 = arith.constant 0 : index
      %c0_31 = arith.constant 0 : index
      %42 = vector.load %arg9[%c0_30, %c0_31] : memref<8x1xf32, #tpu.memory_space<vmem>>, vector<8x1xf32>
      %43 = tpu.reciprocal %42 {approx = true} : vector<8x1xf32> -> vector<8x1xf32>
      %c0_32 = arith.constant 0 : index
      %c0_33 = arith.constant 0 : index
      %44 = vector.load %arg10[%c0_32, %c0_33] : memref<8x16xf32, #tpu.memory_space<vmem>>, vector<8x16xf32>
      %45 = vector.broadcast %43 : vector<8x1xf32> to vector<8x16xf32>
      %46 = arith.mulf %44, %45 : vector<8x16xf32>
      %47 = arith.truncf %46 : vector<8x16xf32> to vector<8x16xbf16>
      %c0_34 = arith.constant 0 : index
      %c0_35 = arith.constant 0 : index
      %c0_36 = arith.constant 0 : index
      %48 = vector.load %arg7[%c0_34, %c0_35, %c0_36] : memref<1x8x16xbf16, #tpu.memory_space<vmem>>, vector<1x8x16xbf16>
      %49 = vector.shape_cast %48 : vector<1x8x16xbf16> to vector<8x16xbf16>
      %50 = vector.shape_cast %47 : vector<8x16xbf16> to vector<1x8x16xbf16>
      tpu.vector_store %arg7[%c0_34, %c0_35, %c0_36], %50 {strides = array<i32>} : memref<1x8x16xbf16, #tpu.memory_space<vmem>>, vector<1x8x16xbf16>,
    } else {
    }
    return
  }
  func.func @transform_0(%arg0: i32, %arg1: i32, %arg2: i32) -> (i32, i32, i32) {
    %c0_i32 = arith.constant 0 : i32
    %c0_i32_0 = arith.constant 0 : i32
    return %arg0, %arg1, %c0_i32 : i32, i32, i32
  }
  func.func @transform_1(%arg0: i32, %arg1: i32, %arg2: i32) -> (i32, i32, i32) {
    %c0_i32 = arith.constant 0 : i32
    %c0_i32_0 = arith.constant 0 : i32
    return %arg0, %arg2, %c0_i32 : i32, i32, i32
  }
  func.func @transform_2(%arg0: i32, %arg1: i32, %arg2: i32) -> (i32, i32, i32) {
    %c0_i32 = arith.constant 0 : i32
    %c0_i32_0 = arith.constant 0 : i32
    return %arg0, %arg2, %c0_i32 : i32, i32, i32
  }
  func.func @transform_3(%arg0: i32, %arg1: i32, %arg2: i32) -> (i32, i32, i32) {
    %c0_i32 = arith.constant 0 : i32
    %c0_i32_0 = arith.constant 0 : i32
    return %arg0, %c0_i32, %arg2 : i32, i32, i32
  }
  func.func @transform_4(%arg0: i32, %arg1: i32, %arg2: i32) -> (i32, i32, i32) {
    %c0_i32 = arith.constant 0 : i32
    %c0_i32_0 = arith.constant 0 : i32
    return %arg0, %arg1, %c0_i32 : i32, i32, i32
  }
}

module attributes {stable_mosaic.version = 11 : i64} {
  func.func @_dense_kernel(%arg0: i32, %arg1: i32, %arg2: i32, %arg3: memref<16x32xbf16, #tpu.memory_space<vmem>>, %arg4: memref<32x32xbf16, #tpu.memory_space<vmem>>, %arg5: memref<1x32xf32, #tpu.memory_space<vmem>>, %arg6: memref<16x32xbf16, #tpu.memory_space<vmem>>, %arg7: memref<16x32xf32, #tpu.memory_space<vmem>>) attributes {dimension_semantics = [#tpu.dimension_semantics<parallel>, #tpu.dimension_semantics<parallel>, #tpu.dimension_semantics<arbitrary>], iteration_bounds = array<i64: 1, 1, 1>, scalar_prefetch = 0 : i64, scratch_operands = 1 : i64, tpu.core_type = #tpu.core_type<tc>, window_params = [{transform_indices = @transform_0, window_bounds = array<i64: 16, 32>}, {transform_indices = @transform_1, window_bounds = array<i64: 32, 32>}, {transform_indices = @transform_2, window_bounds = array<i64: 1, 32>}, {transform_indices = @transform_3, window_bounds = array<i64: 16, 32>}]} {
    %c0_i32 = arith.constant 0 : i32
    %0 = arith.cmpi eq, %arg2, %c0_i32 : i32
    %1 = arith.extui %0 : i1 to i32
    %c0_i32_0 = arith.constant 0 : i32
    %2 = arith.cmpi ne, %1, %c0_i32_0 : i32
    scf.if %2 {
      %cst_10 = arith.constant 0.000000e+00 : f32
      %12 = vector.broadcast %cst_10 : f32 to vector<16x32xf32>
      %c0_11 = arith.constant 0 : index
      %c0_12 = arith.constant 0 : index
      %13 = vector.load %arg7[%c0_11, %c0_12] : memref<16x32xf32, #tpu.memory_space<vmem>>, vector<16x32xf32>
      tpu.vector_store %arg7[%c0_11, %c0_12], %12 {strides = array<i32>} : memref<16x32xf32, #tpu.memory_space<vmem>>, vector<16x32xf32>,
    } else {
    }
    %c0 = arith.constant 0 : index
    %c0_1 = arith.constant 0 : index
    %3 = vector.load %arg7[%c0, %c0_1] : memref<16x32xf32, #tpu.memory_space<vmem>>, vector<16x32xf32>
    %c0_2 = arith.constant 0 : index
    %c0_3 = arith.constant 0 : index
    %4 = vector.load %arg3[%c0_2, %c0_3] : memref<16x32xbf16, #tpu.memory_space<vmem>>, vector<16x32xbf16>
    %c0_4 = arith.constant 0 : index
    %c0_5 = arith.constant 0 : index
    %5 = vector.load %arg4[%c0_4, %c0_5] : memref<32x32xbf16, #tpu.memory_space<vmem>>, vector<32x32xbf16>
    %cst = arith.constant dense<0.000000e+00> : vector<16x32xf32>
    %6 = tpu.matmul %4, %5, %cst {dimension_numbers = #tpu.dot_dimension_numbers<[1], [0], [0], [1], [0, 0, 1, 1], [], []>} : vector<16x32xbf16>, vector<32x32xbf16>, vector<16x32xf32> -> vector<16x32xf32>
    %7 = arith.addf %3, %6 : vector<16x32xf32>
    %c0_6 = arith.constant 0 : index
    %c0_7 = arith.constant 0 : index
    %8 = vector.load %arg7[%c0_6, %c0_7] : memref<16x32xf32, #tpu.memory_space<vmem>>, vector<16x32xf32>
    tpu.vector_store %arg7[%c0_6, %c0_7], %7 {strides = array<i32>} : memref<16x32xf32, #tpu.memory_space<vmem>>, vector<16x32xf32>,
    %c0_i32_8 = arith.constant 0 : i32
    %9 = arith.cmpi eq, %arg2, %c0_i32_8 : i32
    %10 = arith.extui %9 : i1 to i32
    %c0_i32_9 = arith.constant 0 : i32
    %11 = arith.cmpi ne, %10, %c0_i32_9 : i32
    scf.if %11 {
      %c0_10 = arith.constant 0 : index
      %c0_11 = arith.constant 0 : index
      %12 = vector.load %arg7[%c0_10, %c0_11] : memref<16x32xf32, #tpu.memory_space<vmem>>, vector<16x32xf32>
      %c0_12 = arith.constant 0 : index
      %c0_13 = arith.constant 0 : index
      %13 = vector.load %arg5[%c0_12, %c0_13] : memref<1x32xf32, #tpu.memory_space<vmem>>, vector<1x32xf32>
      %14 = vector.broadcast %13 : vector<1x32xf32> to vector<16x32xf32>
      %15 = arith.addf %12, %14 : vector<16x32xf32>
      %16 = arith.truncf %15 : vector<16x32xf32> to vector<16x32xbf16>
      %c0_14 = arith.constant 0 : index
      %c0_15 = arith.constant 0 : index
      %17 = vector.load %arg6[%c0_14, %c0_15] : memref<16x32xbf16, #tpu.memory_space<vmem>>, vector<16x32xbf16>
      tpu.vector_store %arg6[%c0_14, %c0_15], %16 {strides = array<i32>} : memref<16x32xbf16, #tpu.memory_space<vmem>>, vector<16x32xbf16>,
    } else {
    }
    return
  }
  func.func @transform_0(%arg0: i32, %arg1: i32, %arg2: i32) -> (i32, i32) {
    %c0_i32 = arith.constant 0 : i32
    return %arg0, %arg2 : i32, i32
  }
  func.func @transform_1(%arg0: i32, %arg1: i32, %arg2: i32) -> (i32, i32) {
    %c0_i32 = arith.constant 0 : i32
    return %arg2, %arg1 : i32, i32
  }
  func.func @transform_2(%arg0: i32, %arg1: i32, %arg2: i32) -> (i32, i32) {
    %c0_i32 = arith.constant 0 : i32
    %c0_i32_0 = arith.constant 0 : i32
    return %c0_i32, %arg1 : i32, i32
  }
  func.func @transform_3(%arg0: i32, %arg1: i32, %arg2: i32) -> (i32, i32) {
    %c0_i32 = arith.constant 0 : i32
    return %arg0, %arg1 : i32, i32
  }
}

module attributes {stable_mosaic.version = 11 : i64} {
  func.func @_add_ln_kernel(%arg0: i32, %arg1: memref<16x32xbf16, #tpu.memory_space<vmem>>, %arg2: memref<16x32xbf16, #tpu.memory_space<vmem>>, %arg3: memref<1x32xf32, #tpu.memory_space<vmem>>, %arg4: memref<1x32xf32, #tpu.memory_space<vmem>>, %arg5: memref<16x32xbf16, #tpu.memory_space<vmem>>) attributes {dimension_semantics = [#tpu.dimension_semantics<parallel>], iteration_bounds = array<i64: 1>, scalar_prefetch = 0 : i64, scratch_operands = 0 : i64, tpu.core_type = #tpu.core_type<tc>, window_params = [{transform_indices = @transform_0, window_bounds = array<i64: 16, 32>}, {transform_indices = @transform_1, window_bounds = array<i64: 16, 32>}, {pipeline_mode = #tpu.pipeline_mode<synchronous>, transform_indices = @transform_2, window_bounds = array<i64: 1, 32>}, {pipeline_mode = #tpu.pipeline_mode<synchronous>, transform_indices = @transform_3, window_bounds = array<i64: 1, 32>}, {transform_indices = @transform_4, window_bounds = array<i64: 16, 32>}]} {
    %c0 = arith.constant 0 : index
    %c0_0 = arith.constant 0 : index
    %0 = vector.load %arg1[%c0, %c0_0] : memref<16x32xbf16, #tpu.memory_space<vmem>>, vector<16x32xbf16>
    %1 = arith.extf %0 : vector<16x32xbf16> to vector<16x32xf32>
    %c0_1 = arith.constant 0 : index
    %c0_2 = arith.constant 0 : index
    %2 = vector.load %arg2[%c0_1, %c0_2] : memref<16x32xbf16, #tpu.memory_space<vmem>>, vector<16x32xbf16>
    %3 = arith.extf %2 : vector<16x32xbf16> to vector<16x32xf32>
    %4 = arith.addf %1, %3 : vector<16x32xf32>
    %cst = arith.constant dense<0.000000e+00> : vector<16xf32>
    %5 = vector.multi_reduction <add>, %4, %cst [1] : vector<16x32xf32> to vector<16xf32>
    %6 = vector.shape_cast %5 : vector<16xf32> to vector<16x1xf32>
    %cst_3 = arith.constant 3.200000e+01 : f32
    %7 = vector.broadcast %cst_3 : f32 to vector<16x1xf32>
    %8 = arith.divf %6, %7 : vector<16x1xf32>
    %9 = vector.broadcast %8 : vector<16x1xf32> to vector<16x32xf32>
    %10 = arith.subf %4, %9 : vector<16x32xf32>
    %11 = arith.mulf %10, %10 : vector<16x32xf32>
    %cst_4 = arith.constant dense<0.000000e+00> : vector<16xf32>
    %12 = vector.multi_reduction <add>, %11, %cst_4 [1] : vector<16x32xf32> to vector<16xf32>
    %13 = vector.shape_cast %12 : vector<16xf32> to vector<16x1xf32>
    %cst_5 = arith.constant 3.200000e+01 : f32
    %14 = vector.broadcast %cst_5 : f32 to vector<16x1xf32>
    %15 = arith.divf %13, %14 : vector<16x1xf32>
    %cst_6 = arith.constant 9.99999996E-13 : f32
    %16 = vector.broadcast %cst_6 : f32 to vector<16x1xf32>
    %17 = arith.addf %15, %16 : vector<16x1xf32>
    %18 = math.rsqrt %17 : vector<16x1xf32>
    %19 = vector.broadcast %8 : vector<16x1xf32> to vector<16x32xf32>
    %20 = arith.subf %4, %19 : vector<16x32xf32>
    %21 = vector.broadcast %18 : vector<16x1xf32> to vector<16x32xf32>
    %22 = arith.mulf %20, %21 : vector<16x32xf32>
    %c0_7 = arith.constant 0 : index
    %c0_8 = arith.constant 0 : index
    %23 = vector.load %arg3[%c0_7, %c0_8] : memref<1x32xf32, #tpu.memory_space<vmem>>, vector<1x32xf32>
    %24 = vector.broadcast %23 : vector<1x32xf32> to vector<16x32xf32>
    %25 = arith.mulf %22, %24 : vector<16x32xf32>
    %c0_9 = arith.constant 0 : index
    %c0_10 = arith.constant 0 : index
    %26 = vector.load %arg4[%c0_9, %c0_10] : memref<1x32xf32, #tpu.memory_space<vmem>>, vector<1x32xf32>
    %27 = vector.broadcast %26 : vector<1x32xf32> to vector<16x32xf32>
    %28 = arith.addf %25, %27 : vector<16x32xf32>
    %29 = arith.truncf %28 : vector<16x32xf32> to vector<16x32xbf16>
    %c0_11 = arith.constant 0 : index
    %c0_12 = arith.constant 0 : index
    %30 = vector.load %arg5[%c0_11, %c0_12] : memref<16x32xbf16, #tpu.memory_space<vmem>>, vector<16x32xbf16>
    tpu.vector_store %arg5[%c0_11, %c0_12], %29 {strides = array<i32>} : memref<16x32xbf16, #tpu.memory_space<vmem>>, vector<16x32xbf16>,
    return
  }
  func.func @transform_0(%arg0: i32) -> (i32, i32) {
    %c0_i32 = arith.constant 0 : i32
    %c0_i32_0 = arith.constant 0 : i32
    return %arg0, %c0_i32 : i32, i32
  }
  func.func @transform_1(%arg0: i32) -> (i32, i32) {
    %c0_i32 = arith.constant 0 : i32
    %c0_i32_0 = arith.constant 0 : i32
    return %arg0, %c0_i32 : i32, i32
  }
  func.func @transform_2(%arg0: i32) -> (i32, i32) {
    %c0_i32 = arith.constant 0 : i32
    %c0_i32_0 = arith.constant 0 : i32
    %c0_i32_1 = arith.constant 0 : i32
    return %c0_i32, %c0_i32_0 : i32, i32
  }
  func.func @transform_3(%arg0: i32) -> (i32, i32) {
    %c0_i32 = arith.constant 0 : i32
    %c0_i32_0 = arith.constant 0 : i32
    %c0_i32_1 = arith.constant 0 : i32
    return %c0_i32, %c0_i32_0 : i32, i32
  }
  func.func @transform_4(%arg0: i32) -> (i32, i32) {
    %c0_i32 = arith.constant 0 : i32
    %c0_i32_0 = arith.constant 0 : i32
    return %arg0, %c0_i32 : i32, i32
  }
}

module attributes {stable_mosaic.version = 11 : i64} {
  func.func @_dense_kernel(%arg0: i32, %arg1: i32, %arg2: i32, %arg3: memref<16x64xbf16, #tpu.memory_space<vmem>>, %arg4: memref<64x32xbf16, #tpu.memory_space<vmem>>, %arg5: memref<1x32xf32, #tpu.memory_space<vmem>>, %arg6: memref<16x32xbf16, #tpu.memory_space<vmem>>, %arg7: memref<16x32xf32, #tpu.memory_space<vmem>>) attributes {dimension_semantics = [#tpu.dimension_semantics<parallel>, #tpu.dimension_semantics<parallel>, #tpu.dimension_semantics<arbitrary>], iteration_bounds = array<i64: 1, 1, 1>, scalar_prefetch = 0 : i64, scratch_operands = 1 : i64, tpu.core_type = #tpu.core_type<tc>, window_params = [{transform_indices = @transform_0, window_bounds = array<i64: 16, 64>}, {transform_indices = @transform_1, window_bounds = array<i64: 64, 32>}, {transform_indices = @transform_2, window_bounds = array<i64: 1, 32>}, {transform_indices = @transform_3, window_bounds = array<i64: 16, 32>}]} {
    %c0_i32 = arith.constant 0 : i32
    %0 = arith.cmpi eq, %arg2, %c0_i32 : i32
    %1 = arith.extui %0 : i1 to i32
    %c0_i32_0 = arith.constant 0 : i32
    %2 = arith.cmpi ne, %1, %c0_i32_0 : i32
    scf.if %2 {
      %cst_10 = arith.constant 0.000000e+00 : f32
      %12 = vector.broadcast %cst_10 : f32 to vector<16x32xf32>
      %c0_11 = arith.constant 0 : index
      %c0_12 = arith.constant 0 : index
      %13 = vector.load %arg7[%c0_11, %c0_12] : memref<16x32xf32, #tpu.memory_space<vmem>>, vector<16x32xf32>
      tpu.vector_store %arg7[%c0_11, %c0_12], %12 {strides = array<i32>} : memref<16x32xf32, #tpu.memory_space<vmem>>, vector<16x32xf32>,
    } else {
    }
    %c0 = arith.constant 0 : index
    %c0_1 = arith.constant 0 : index
    %3 = vector.load %arg7[%c0, %c0_1] : memref<16x32xf32, #tpu.memory_space<vmem>>, vector<16x32xf32>
    %c0_2 = arith.constant 0 : index
    %c0_3 = arith.constant 0 : index
    %4 = vector.load %arg3[%c0_2, %c0_3] : memref<16x64xbf16, #tpu.memory_space<vmem>>, vector<16x64xbf16>
    %c0_4 = arith.constant 0 : index
    %c0_5 = arith.constant 0 : index
    %5 = vector.load %arg4[%c0_4, %c0_5] : memref<64x32xbf16, #tpu.memory_space<vmem>>, vector<64x32xbf16>
    %cst = arith.constant dense<0.000000e+00> : vector<16x32xf32>
    %6 = tpu.matmul %4, %5, %cst {dimension_numbers = #tpu.dot_dimension_numbers<[1], [0], [0], [1], [0, 0, 1, 1], [], []>} : vector<16x64xbf16>, vector<64x32xbf16>, vector<16x32xf32> -> vector<16x32xf32>
    %7 = arith.addf %3, %6 : vector<16x32xf32>
    %c0_6 = arith.constant 0 : index
    %c0_7 = arith.constant 0 : index
    %8 = vector.load %arg7[%c0_6, %c0_7] : memref<16x32xf32, #tpu.memory_space<vmem>>, vector<16x32xf32>
    tpu.vector_store %arg7[%c0_6, %c0_7], %7 {strides = array<i32>} : memref<16x32xf32, #tpu.memory_space<vmem>>, vector<16x32xf32>,
    %c0_i32_8 = arith.constant 0 : i32
    %9 = arith.cmpi eq, %arg2, %c0_i32_8 : i32
    %10 = arith.extui %9 : i1 to i32
    %c0_i32_9 = arith.constant 0 : i32
    %11 = arith.cmpi ne, %10, %c0_i32_9 : i32
    scf.if %11 {
      %c0_10 = arith.constant 0 : index
      %c0_11 = arith.constant 0 : index
      %12 = vector.load %arg7[%c0_10, %c0_11] : memref<16x32xf32, #tpu.memory_space<vmem>>, vector<16x32xf32>
      %c0_12 = arith.constant 0 : index
      %c0_13 = arith.constant 0 : index
      %13 = vector.load %arg5[%c0_12, %c0_13] : memref<1x32xf32, #tpu.memory_space<vmem>>, vector<1x32xf32>
      %14 = vector.broadcast %13 : vector<1x32xf32> to vector<16x32xf32>
      %15 = arith.addf %12, %14 : vector<16x32xf32>
      %16 = arith.truncf %15 : vector<16x32xf32> to vector<16x32xbf16>
      %c0_14 = arith.constant 0 : index
      %c0_15 = arith.constant 0 : index
      %17 = vector.load %arg6[%c0_14, %c0_15] : memref<16x32xbf16, #tpu.memory_space<vmem>>, vector<16x32xbf16>
      tpu.vector_store %arg6[%c0_14, %c0_15], %16 {strides = array<i32>} : memref<16x32xbf16, #tpu.memory_space<vmem>>, vector<16x32xbf16>,
    } else {
    }
    return
  }
  func.func @transform_0(%arg0: i32, %arg1: i32, %arg2: i32) -> (i32, i32) {
    %c0_i32 = arith.constant 0 : i32
    return %arg0, %arg2 : i32, i32
  }
  func.func @transform_1(%arg0: i32, %arg1: i32, %arg2: i32) -> (i32, i32) {
    %c0_i32 = arith.constant 0 : i32
    return %arg2, %arg1 : i32, i32
  }
  func.func @transform_2(%arg0: i32, %arg1: i32, %arg2: i32) -> (i32, i32) {
    %c0_i32 = arith.constant 0 : i32
    %c0_i32_0 = arith.constant 0 : i32
    return %c0_i32, %arg1 : i32, i32
  }
  func.func @transform_3(%arg0: i32, %arg1: i32, %arg2: i32) -> (i32, i32) {
    %c0_i32 = arith.constant 0 : i32
    return %arg0, %arg1 : i32, i32
  }
}

module attributes {stable_mosaic.version = 11 : i64} {
  func.func @_pooler_cls_kernel(%arg0: memref<2x32xf32, #tpu.memory_space<vmem>>, %arg1: memref<32x32xf32, #tpu.memory_space<vmem>>, %arg2: memref<1x32xf32, #tpu.memory_space<vmem>>, %arg3: memref<32x4xf32, #tpu.memory_space<vmem>>, %arg4: memref<1x4xf32, #tpu.memory_space<vmem>>, %arg5: memref<2x4xf32, #tpu.memory_space<vmem>>) attributes {dimension_semantics = [], scalar_prefetch = 0 : i64, scratch_operands = 0 : i64, tpu.core_type = #tpu.core_type<tc>} {
    %c0 = arith.constant 0 : index
    %c0_0 = arith.constant 0 : index
    %0 = vector.load %arg0[%c0, %c0_0] : memref<2x32xf32, #tpu.memory_space<vmem>>, vector<2x32xf32>
    %c0_1 = arith.constant 0 : index
    %c0_2 = arith.constant 0 : index
    %1 = vector.load %arg1[%c0_1, %c0_2] : memref<32x32xf32, #tpu.memory_space<vmem>>, vector<32x32xf32>
    %cst = arith.constant dense<0.000000e+00> : vector<2x32xf32>
    %2 = tpu.matmul %0, %1, %cst {dimension_numbers = #tpu.dot_dimension_numbers<[1], [0], [0], [1], [0, 0, 1, 1], [], []>} : vector<2x32xf32>, vector<32x32xf32>, vector<2x32xf32> -> vector<2x32xf32>
    %c0_3 = arith.constant 0 : index
    %c0_4 = arith.constant 0 : index
    %3 = vector.load %arg2[%c0_3, %c0_4] : memref<1x32xf32, #tpu.memory_space<vmem>>, vector<1x32xf32>
    %4 = vector.broadcast %3 : vector<1x32xf32> to vector<2x32xf32>
    %5 = arith.addf %2, %4 : vector<2x32xf32>
    %6 = math.tanh %5 : vector<2x32xf32>
    %c0_5 = arith.constant 0 : index
    %c0_6 = arith.constant 0 : index
    %7 = vector.load %arg3[%c0_5, %c0_6] : memref<32x4xf32, #tpu.memory_space<vmem>>, vector<32x4xf32>
    %cst_7 = arith.constant dense<0.000000e+00> : vector<2x4xf32>
    %8 = tpu.matmul %6, %7, %cst_7 {dimension_numbers = #tpu.dot_dimension_numbers<[1], [0], [0], [1], [0, 0, 1, 1], [], []>} : vector<2x32xf32>, vector<32x4xf32>, vector<2x4xf32> -> vector<2x4xf32>
    %c0_8 = arith.constant 0 : index
    %c0_9 = arith.constant 0 : index
    %9 = vector.load %arg4[%c0_8, %c0_9] : memref<1x4xf32, #tpu.memory_space<vmem>>, vector<1x4xf32>
    %10 = vector.broadcast %9 : vector<1x4xf32> to vector<2x4xf32>
    %11 = arith.addf %8, %10 : vector<2x4xf32>
    %c0_10 = arith.constant 0 : index
    %c0_11 = arith.constant 0 : index
    %12 = vector.load %arg5[%c0_10, %c0_11] : memref<2x4xf32, #tpu.memory_space<vmem>>, vector<2x4xf32>
    tpu.vector_store %arg5[%c0_10, %c0_11], %11 {strides = array<i32>} : memref<2x4xf32, #tpu.memory_space<vmem>>, vector<2x4xf32>,
    return
  }
}

module attributes {stable_mosaic.version = 11 : i64} {
  func.func @_dense_kernel(%arg0: i32, %arg1: i32, %arg2: i32, %arg3: memref<16x32xbf16, #tpu.memory_space<vmem>>, %arg4: memref<32x64xbf16, #tpu.memory_space<vmem>>, %arg5: memref<1x64xf32, #tpu.memory_space<vmem>>, %arg6: memref<16x64xbf16, #tpu.memory_space<vmem>>, %arg7: memref<16x64xf32, #tpu.memory_space<vmem>>) attributes {dimension_semantics = [#tpu.dimension_semantics<parallel>, #tpu.dimension_semantics<parallel>, #tpu.dimension_semantics<arbitrary>], iteration_bounds = array<i64: 1, 1, 1>, scalar_prefetch = 0 : i64, scratch_operands = 1 : i64, tpu.core_type = #tpu.core_type<tc>, window_params = [{transform_indices = @transform_0, window_bounds = array<i64: 16, 32>}, {transform_indices = @transform_1, window_bounds = array<i64: 32, 64>}, {transform_indices = @transform_2, window_bounds = array<i64: 1, 64>}, {transform_indices = @transform_3, window_bounds = array<i64: 16, 64>}]} {
    %c0_i32 = arith.constant 0 : i32
    %0 = arith.cmpi eq, %arg2, %c0_i32 : i32
    %1 = arith.extui %0 : i1 to i32
    %c0_i32_0 = arith.constant 0 : i32
    %2 = arith.cmpi ne, %1, %c0_i32_0 : i32
    scf.if %2 {
      %cst_10 = arith.constant 0.000000e+00 : f32
      %12 = vector.broadcast %cst_10 : f32 to vector<16x64xf32>
      %c0_11 = arith.constant 0 : index
      %c0_12 = arith.constant 0 : index
      %13 = vector.load %arg7[%c0_11, %c0_12] : memref<16x64xf32, #tpu.memory_space<vmem>>, vector<16x64xf32>
      tpu.vector_store %arg7[%c0_11, %c0_12], %12 {strides = array<i32>} : memref<16x64xf32, #tpu.memory_space<vmem>>, vector<16x64xf32>,
    } else {
    }
    %c0 = arith.constant 0 : index
    %c0_1 = arith.constant 0 : index
    %3 = vector.load %arg7[%c0, %c0_1] : memref<16x64xf32, #tpu.memory_space<vmem>>, vector<16x64xf32>
    %c0_2 = arith.constant 0 : index
    %c0_3 = arith.constant 0 : index
    %4 = vector.load %arg3[%c0_2, %c0_3] : memref<16x32xbf16, #tpu.memory_space<vmem>>, vector<16x32xbf16>
    %c0_4 = arith.constant 0 : index
    %c0_5 = arith.constant 0 : index
    %5 = vector.load %arg4[%c0_4, %c0_5] : memref<32x64xbf16, #tpu.memory_space<vmem>>, vector<32x64xbf16>
    %cst = arith.constant dense<0.000000e+00> : vector<16x64xf32>
    %6 = tpu.matmul %4, %5, %cst {dimension_numbers = #tpu.dot_dimension_numbers<[1], [0], [0], [1], [0, 0, 1, 1], [], []>} : vector<16x32xbf16>, vector<32x64xbf16>, vector<16x64xf32> -> vector<16x64xf32>
    %7 = arith.addf %3, %6 : vector<16x64xf32>
    %c0_6 = arith.constant 0 : index
    %c0_7 = arith.constant 0 : index
    %8 = vector.load %arg7[%c0_6, %c0_7] : memref<16x64xf32, #tpu.memory_space<vmem>>, vector<16x64xf32>
    tpu.vector_store %arg7[%c0_6, %c0_7], %7 {strides = array<i32>} : memref<16x64xf32, #tpu.memory_space<vmem>>, vector<16x64xf32>,
    %c0_i32_8 = arith.constant 0 : i32
    %9 = arith.cmpi eq, %arg2, %c0_i32_8 : i32
    %10 = arith.extui %9 : i1 to i32
    %c0_i32_9 = arith.constant 0 : i32
    %11 = arith.cmpi ne, %10, %c0_i32_9 : i32
    scf.if %11 {
      %c0_10 = arith.constant 0 : index
      %c0_11 = arith.constant 0 : index
      %12 = vector.load %arg7[%c0_10, %c0_11] : memref<16x64xf32, #tpu.memory_space<vmem>>, vector<16x64xf32>
      %c0_12 = arith.constant 0 : index
      %c0_13 = arith.constant 0 : index
      %13 = vector.load %arg5[%c0_12, %c0_13] : memref<1x64xf32, #tpu.memory_space<vmem>>, vector<1x64xf32>
      %14 = vector.broadcast %13 : vector<1x64xf32> to vector<16x64xf32>
      %15 = arith.addf %12, %14 : vector<16x64xf32>
      %16 = arith.mulf %15, %15 : vector<16x64xf32>
      %17 = arith.mulf %15, %16 : vector<16x64xf32>
      %cst_14 = arith.constant 4.471500e-02 : f32
      %18 = vector.broadcast %cst_14 : f32 to vector<16x64xf32>
      %19 = arith.mulf %18, %17 : vector<16x64xf32>
      %20 = arith.addf %15, %19 : vector<16x64xf32>
      %cst_15 = arith.constant 0.797884583 : f32
      %21 = vector.broadcast %cst_15 : f32 to vector<16x64xf32>
      %22 = arith.mulf %21, %20 : vector<16x64xf32>
      %23 = math.tanh %22 : vector<16x64xf32>
      %cst_16 = arith.constant 1.000000e+00 : f32
      %24 = vector.broadcast %cst_16 : f32 to vector<16x64xf32>
      %25 = arith.addf %24, %23 : vector<16x64xf32>
      %cst_17 = arith.constant 5.000000e-01 : f32
      %26 = vector.broadcast %cst_17 : f32 to vector<16x64xf32>
      %27 = arith.mulf %26, %25 : vector<16x64xf32>
      %28 = arith.mulf %15, %27 : vector<16x64xf32>
      %29 = arith.truncf %28 : vector<16x64xf32> to vector<16x64xbf16>
      %c0_18 = arith.constant 0 : index
      %c0_19 = arith.constant 0 : index
      %30 = vector.load %arg6[%c0_18, %c0_19] : memref<16x64xbf16, #tpu.memory_space<vmem>>, vector<16x64xbf16>
      tpu.vector_store %arg6[%c0_18, %c0_19], %29 {strides = array<i32>} : memref<16x64xbf16, #tpu.memory_space<vmem>>, vector<16x64xbf16>,
    } else {
    }
    return
  }
  func.func @transform_0(%arg0: i32, %arg1: i32, %arg2: i32) -> (i32, i32) {
    %c0_i32 = arith.constant 0 : i32
    return %arg0, %arg2 : i32, i32
  }
  func.func @transform_1(%arg0: i32, %arg1: i32, %arg2: i32) -> (i32, i32) {
    %c0_i32 = arith.constant 0 : i32
    return %arg2, %arg1 : i32, i32
  }
  func.func @transform_2(%arg0: i32, %arg1: i32, %arg2: i32) -> (i32, i32) {
    %c0_i32 = arith.constant 0 : i32
    %c0_i32_0 = arith.constant 0 : i32
    return %c0_i32, %arg1 : i32, i32
  }
  func.func @transform_3(%arg0: i32, %arg1: i32, %arg2: i32) -> (i32, i32) {
    %c0_i32 = arith.constant 0 : i32
    return %arg0, %arg1 : i32, i32
  }
}

</mosaic_0001>

<bundles_post_ra>
// kernel: text_model_forward.12
= control target key start
LH: loop header
LB: loop body
LE: loop exit
PB: predicated region body
PF: predicated region fallthrough
CT: control target
= control target key end

     0   :  { %vm19_vm0 = vcmask 261120   ;;  %v150_v0 = vmov 0.0   ;;  %vm151_vm1 = vmmov 0   ;;  %vm118_vm2 = vcmask 257024   ;;  %s195_s1 = inlined_call_operand.vmem [shape: bf16[32,32], index: 1, kind: input, shape index: {}]   ;;  %s196_s0 = inlined_call_operand.vmem [shape: bf16[16,32], index: 0, kind: input, shape index: {}]   ;;  %s197_s2 = inlined_call_operand.vmem [shape: f32[1,32], index: 2, kind: input, shape index: {}]   ;;  %s198_s3 = inlined_call_operand.vmem [shape: bf16[16,32], index: 3, kind: output, shape index: {}]  }
   0x1   :  { %137 = vmatprep.subr.bf16.mxu0 %v150_v0  ;;  %v147_v1 = vld [vmem:[%s195_s1] sm:$0xff]   ;;  %141 = vmatprep.mubr.msk.bf16.mxu0 %vm151_vm1, %v150_v0  ;;  %20 = vst.msk [vmem:[#allocation2] sm:$0xff] %vm19_vm0, %v150_v0  ;;  %21 = vst.msk [vmem:[#allocation2 + $0x8] sm:$0xff] %vm19_vm0, %v150_v0  ;;  %v148_v2 = vld [vmem:[%s195_s1 + $0x8] sm:$0xff]  }
   0x2   :  { %138 = vmatpush3.bf16.msra.mxu0 %v147_v1  ;;  %v149_v3 = vld [vmem:[%s196_s0] sm:$0xff]  }
   0x3   :  { %139 = vmatprep.subr.bf16.mxu0 %v150_v0  ;;  %v129_v12 = vld [vmem:[%s197_s2] ss:$0 sm:$0xff] }
   0x6   :  { %140 = vmatpush3.bf16.msra.mxu0 %v148_v2 }
   0x8   :  { %v22_v4 = vld [vmem:[#allocation2] sm:$0xff]  ;;  %v23_v6 = vld [vmem:[#allocation2 + $0x8] sm:$0xff] }
   0x9   :  { %142 = vmatmul.mubr.msk.bf16.vlgmr.msra.gmra.mrb[0].mxu0 %vm19_vm0, %v149_v3 }
  0xdc   :  { %v85_v5 = vpop.f32.mrb[0].mxu0 }
  0xdd   :  { %v92_v7 = vadd.f32 %v85_v5, %v22_v4  ;;  %v143_v8 = vpop.f32.mrb[1].mxu0 }
  0xde   :  { %v88_v9 = vpop.f32.mrb[2].mxu0 }
  0xdf   :  { %94 = vst.msk [vmem:[#allocation2] sm:$0xff] %vm19_vm0, %v92_v7  ;;  %v93_v10 = vadd.f32 %v88_v9, %v23_v6  ;;  %v144_v11 = vpop.f32.mrb[3].mxu0 }
  0xe1   :  { %95 = vst.msk [vmem:[#allocation2 + $0x8] sm:$0xff] %vm19_vm0, %v93_v10 }
  0xe6   :  { %v99_v13 = vld [vmem:[#allocation2] sm:$0xff] }
  0xe7   :  { %v108_v14 = vadd.f32 %v129_v12, %v99_v13 }
  0xe8   :  { %v100_v15 = vld [vmem:[#allocation2 + $0x8] sm:$0xff] }
  0xe9   :  { %v132_v16 = vpack.c.bf16 %v108_v14, %v108_v14  ;;  %v109_v17 = vadd.f32 %v129_v12, %v100_v15 }
  0xeb   :  { %119 = vst.msk [vmem:[%s198_s3] sm:$0xf] %vm118_vm2, %v132_v16  ;;  %v133_v18 = vpack.c.bf16 %v109_v17, %v109_v17 }
  0xed   :  { %120 = vst.msk [vmem:[%s198_s3 + $0x4] sm:$0xf] %vm118_vm2, %v133_v18 }

// kernel: text_model_forward.9
= control target key start
LH: loop header
LB: loop body
LE: loop exit
PB: predicated region body
PF: predicated region fallthrough
CT: control target
= control target key end

     0   :  { %vm16_vm0 = vcmask 261120   ;;  %vm70_vm1 = vcmask 257024   ;;  %s129_s0 = inlined_call_operand.vmem [shape: f32[16,32], index: 0, kind: input, shape index: {}]   ;;  %s130_s1 = inlined_call_operand.vmem [shape: f32[1,32], index: 1, kind: input, shape index: {}]   ;;  %s131_s2 = inlined_call_operand.vmem [shape: f32[1,32], index: 2, kind: input, shape index: {}]   ;;  %s132_s3 = inlined_call_operand.vmem [shape: bf16[16,32], index: 3, kind: output, shape index: {}]  }
   0x1   :  { %v14_v0 = vld [vmem:[%s129_s0] sm:$0xff]  ;;  %v15_v1 = vld [vmem:[%s129_s0 + $0x8] sm:$0xff] }
   0x2   :  { %v17_v2 = vsel %vm16_vm0, %v14_v0, 0.0  ;;  %v20_v3 = vsel %vm16_vm0, %v15_v1, 0.0  ;;  %v77_v21 = vld [vmem:[%s130_s1] ss:$0 sm:$0xff] }
   0x3   :  { %18 = vadd.xlane.f32.xlu0 %v17_v2  ;;  %v78_v23 = vld [vmem:[%s131_s2] ss:$0 sm:$0xff] }
   0x7   :  { %21 = vadd.xlane.f32.xlu0 %v20_v3 }
  0x90   :  { %v19_v4 = vpop.xlane.xlu0 %18 }
  0x91   :  { %v24_v5 = vmul.f32 0.03125, %v19_v4 }
  0x93   :  { %v26_v6 = vsub.f32 %v14_v0, %v24_v5 }
  0x94   :  { %v22_v7 = vpop.xlane.xlu0 %21 }
  0x95   :  { %v25_v8 = vmul.f32 0.03125, %v22_v7  ;;  %v28_v9 = vmul.f32 %v26_v6, %v26_v6 }
  0x97   :  { %v27_v10 = vsub.f32 %v15_v1, %v25_v8  ;;  %v30_v11 = vsel %vm16_vm0, %v28_v9, 0.0 }
  0x98   :  { %31 = vadd.xlane.f32.xlu1 %v30_v11 }
  0x99   :  { %v29_v12 = vmul.f32 %v27_v10, %v27_v10 }
  0x9b   :  { %v33_v13 = vsel %vm16_vm0, %v29_v12, 0.0 }
  0x9c   :  { %34 = vadd.xlane.f32.xlu1 %v33_v13 }
 0x125   :  { %v32_v14 = vpop.xlane.xlu1 %31 }
 0x126   :  { %v36_v15 = vmul.f32 0.03125, %v32_v14 }
 0x128   :  { %v38_v16 = vadd.f32 1e-12, %v36_v15 }
 0x129   :  { %v35_v17 = vpop.xlane.xlu1 %34 }
 0x12a   :  { %83 = vrsqrt.f32 %v38_v16  ;;  %v37_v18 = vmul.f32 0.03125, %v35_v17 }
 0x12c   :  { %v39_v19 = vadd.f32 1e-12, %v37_v18 }
 0x12e   :  { %85 = vrsqrt.f32 %v39_v19 }
 0x134   :  { %v84_v20 = vpop.eup %83 }
 0x135   :  { %v42_v22 = vmul.f32 %v84_v20, %v26_v6 }
 0x137   :  { %v51_v24 = vmul.f32 %v77_v21, %v42_v22 }
 0x138   :  { %v86_v25 = vpop.eup %85 }
 0x139   :  { %v60_v26 = vadd.f32 %v78_v23, %v51_v24  ;;  %v43_v27 = vmul.f32 %v86_v25, %v27_v10 }
 0x13b   :  { %v81_v28 = vpack.c.bf16 %v60_v26, %v60_v26  ;;  %v52_v29 = vmul.f32 %v77_v21, %v43_v27 }
 0x13d   :  { %71 = vst.msk [vmem:[%s132_s3] sm:$0xf] %vm70_vm1, %v81_v28  ;;  %v61_v30 = vadd.f32 %v78_v23, %v52_v29 }
 0x13f   :  { %v82_v31 = vpack.c.bf16 %v61_v30, %v61_v30 }
 0x141   :  { %72 = vst.msk [vmem:[%s132_s3 + $0x4] sm:$0xf] %vm70_vm1, %v82_v31 }

// kernel: text_model_forward.10
= control target key start
LH: loop header
LB: loop body
LE: loop exit
PB: predicated region body
PF: predicated region fallthrough
CT: control target
= control target key end

     0   :  { %vm19_vm0 = vcmask 785408   ;;  %v151_v0 = vmov 0.0   ;;  %vm152_vm1 = vmmov 0   ;;  %vm47_vm2 = vcmask 261120   ;;  %s195_s1 = inlined_call_operand.vmem [shape: bf16[32,96], index: 1, kind: input, shape index: {}]   ;;  %s196_s0 = inlined_call_operand.vmem [shape: bf16[16,32], index: 0, kind: input, shape index: {}]   ;;  %s197_s2 = inlined_call_operand.vmem [shape: f32[1,96], index: 2, kind: input, shape index: {}]   ;;  %s198_s3 = inlined_call_operand.vmem [shape: bf16[16,96], index: 3, kind: output, shape index: {}]  }
   0x1   :  { %138 = vmatprep.subr.bf16.mxu0 %v151_v0  ;;  %v148_v1 = vld [vmem:[%s195_s1] sm:$0xff]   ;;  %142 = vmatprep.mubr.msk.bf16.mxu0 %vm152_vm1, %v151_v0  ;;  %20 = vst.msk [vmem:[#allocation2] sm:$0xff] %vm19_vm0, %v151_v0  ;;  %21 = vst.msk [vmem:[#allocation2 + $0x8] sm:$0xff] %vm19_vm0, %v151_v0  ;;  %v149_v2 = vld [vmem:[%s195_s1 + $0x8] sm:$0xff]   ;;  %vm119_vm3 = vcmask 781312  }
   0x2   :  { %139 = vmatpush3.bf16.msra.mxu0 %v148_v1  ;;  %v150_v3 = vld [vmem:[%s196_s0] sm:$0xff]  }
   0x3   :  { %140 = vmatprep.subr.bf16.mxu0 %v151_v0  ;;  %v130_v12 = vld [vmem:[%s197_s2] ss:$0 sm:$0xff] }
   0x6   :  { %141 = vmatpush3.bf16.msra.mxu0 %v149_v2 }
   0x8   :  { %v22_v4 = vld [vmem:[#allocation2] sm:$0xff]  ;;  %v23_v6 = vld [vmem:[#allocation2 + $0x8] sm:$0xff] }
   0x9   :  { %143 = vmatmul.mubr.msk.bf16.vlgmr.msra.gmra.mrb[0].mxu0 %vm47_vm2, %v150_v3 }
  0xdc   :  { %v85_v5 = vpop.f32.mrb[0].mxu0 }
  0xdd   :  { %v92_v7 = vadd.f32 %v85_v5, %v22_v4  ;;  %v144_v8 = vpop.f32.mrb[1].mxu0 }
  0xde   :  { %v88_v9 = vpop.f32.mrb[2].mxu0 }
  0xdf   :  { %95 = vst.msk [vmem:[#allocation2] sm:$0xff] %vm19_vm0, %v92_v7  ;;  %v93_v10 = vadd.f32 %v88_v9, %v23_v6  ;;  %v145_v11 = vpop.f32.mrb[3].mxu0 }
  0xe1   :  { %96 = vst.msk [vmem:[#allocation2 + $0x8] sm:$0xff] %vm19_vm0, %v93_v10 }
  0xe6   :  { %v100_v13 = vld [vmem:[#allocation2] sm:$0xff] }
  0xe7   :  { %v109_v14 = vadd.f32 %v130_v12, %v100_v13 }
  0xe8   :  { %v101_v15 = vld [vmem:[#allocation2 + $0x8] sm:$0xff] }
  0xe9   :  { %v133_v16 = vpack.c.bf16 %v109_v14, %v109_v14  ;;  %v110_v17 = vadd.f32 %v130_v12, %v101_v15 }
  0xeb   :  { %120 = vst.msk [vmem:[%s198_s3] sm:$0xf] %vm119_vm3, %v133_v16  ;;  %v134_v18 = vpack.c.bf16 %v110_v17, %v110_v17 }
  0xed   :  { %121 = vst.msk [vmem:[%s198_s3 + $0x4] sm:$0xf] %vm119_vm3, %v134_v18 }

// kernel: text_model_forward.11
= control target key start
LH: loop header
LB: loop body
LE: loop exit
PB: predicated region body
PF: predicated region fallthrough
CT: control target
= control target key end

     0   :  { %s717_s15 = smov 0   ;;  %s719_s16 = smov 0   ;;  %s776_s0 = inlined_call_operand.vmem [shape: bf16[4,8,16], index: 0, kind: input, shape index: {}]   ;;  %s777_s1 = inlined_call_operand.vmem [shape: bf16[4,8,16], index: 1, kind: input, shape index: {}]   ;;  %s778_s2 = inlined_call_operand.vmem [shape: bf16[4,8,16], index: 2, kind: input, shape index: {}]   ;;  %s779_s3 = inlined_call_operand.vmem [shape: f32[4,1,8], index: 3, kind: input, shape index: {}]   ;;  %s780_s4 = inlined_call_operand.vmem [shape: bf16[4,8,16], index: 4, kind: output, shape index: {}]  }
   0x1   :  { %s721_s17 = smov 0  }
   0x2 LB: > { %s33_s18 = sadd.s32 1, %s682_s16  ;;  %p602_p0 = scmp.ge.s32.totalorder %s686_s17, 1  ;;  %s686_s17 = sphi %s721_s17, %s14_s17   ;;  %s682_s16 = sphi %s719_s16, %s782_s16   ;;  %s678_s15 = sphi %s717_s15, %s781_s15  }
   0x3   : > { %p35_p1 = scmp.ge.s32.totalorder %s33_s18, 4  ;;  %p228_p2 = scmp.lt.s32.totalorder %s686_s17, 5 }
   0x5   : > { %s784_s18 = smov (%p35_p1, %s33_s18), 0  ;;  %p229_p3 = pnand %p602_p0, %p228_p2 }
   0x6   : > { %p278_p4 = scmp.lt.s32.totalorder (!%p229_p3), %s678_s15, 3  ;;  %vm320_vm0 = vcmask (!%p229_p3), 130048   ;;  %v688_v0 = vmov (!%p229_p3), 0.0   ;;  %vm689_vm1 = vmmov (!%p229_p3), 0   ;;  %vm317_vm2 = vcmask (!%p229_p3), 7168  }
   0x7   : > { %232 = sbr.rel (%p229_p3) target bundleno = 827 (0x33b), region = 36  ;;  %616 = vmatprep.subr.bf16.mxu0 (!%p229_p3), %v688_v0  ;;  %321 = vst.msk [vmem:[#allocation4] sm:$0xff] (!%p229_p3), %vm320_vm0, %v688_v0  ;;  %618 = vmatprep.mubr.msk.bf16.mxu0 (!%p229_p3), %vm689_vm1, %v688_v0  ;;  %v690_v4 = vmov (!%p229_p3), -inf   ;;  %vm382_vm3 = vcmask (!%p229_p3), 64512   ;;  %v691_v13 = vmov (!%p229_p3), 0   ;;  %vm417_vm4 = vcmask (!%p229_p3), 1043456  }
   0x8   : > { %622 = vmatprep.subr.bf16.mxu1 (!%p229_p3), %v688_v0  ;;  %624 = vmatprep.mubr.msk.bf16.mxu1 (!%p229_p3), %vm689_vm1, %v688_v0  ;;  %318 = vst.msk [vmem:[#allocation2] sm:$0xff] (!%p229_p3), %vm317_vm2, %v690_v4  ;;  %319 = vst.msk [vmem:[#allocation3] sm:$0xff] (!%p229_p3), %vm317_vm2, %v688_v0  ;;  %vm477_vm5 = vcmask (!%p229_p3), 125952  }
   0x9   : > { %656 = vset.pattern.permute.xlu0 (!%p229_p3), %v691_v13  ;;  %657 = vset.pattern.permute.xlu1 (!%p229_p3), %v691_v13 }
   0xe   : > { %s786_s15 = smov (!%p278_p4, %s678_s15), 3  ;;  %v406_v34 = vld [vmem:[#allocation4] sm:$0xff] }
   0xf   : > { %s736_s19 = sshll.u32 %s786_s15, 2  ;;  %s304_s28 = scalar_lea.vmem %s779_s3, %s786_s15  ;;  %v381_v14 = vld [vmem:[#allocation2] sm:$0xff]  ;;  %v398_v28 = vld [vmem:[#allocation3] sm:$0xff] }
  0x10   : > { %s291_s22 = scalar_lea.vmem %s777_s1, %s736_s19  ;;  %s284_s25 = scalar_lea.vmem %s776_s0, %s736_s19  ;;  %v608_v6 = vld [vmem:[%s304_s28] ss:$0 sm:$0xff] }
  0x11   : > { %v323_v1 = vld [vmem:[%s291_s22] sm:$0xf]  ;;  %s298_s5 = scalar_lea.vmem %s778_s2, %s736_s19  ;;  %s311_s8 = scalar_lea.vmem %s780_s4, %s736_s19 }
  0x12   : > { %v330_v2 = vsel %vm320_vm0, %v323_v1, 0  ;;  %v322_v3 = vld [vmem:[%s284_s25] sm:$0xf] }
  0x13   : > { %617 = vmatpush3.bf16.xpose.msra.mxu0 %v330_v2  ;;  %v324_v18 = vld [vmem:[%s298_s5] sm:$0xf] }
  0x14   : > { %v419_v19 = vsel %vm417_vm4, %v324_v18, 0 }
  0x15   : > { %623 = vmatpush3.bf16.msra.mxu1 %v419_v19 }
  0x1a   : > { %619 = vmatmul.mubr.msk.bf16.vlgmr.msra.gmra.mrb[0].mxu0 %vm320_vm0, %v322_v3 }
  0xed   : > { %v366_v5 = vpop.f32.mrb[0].mxu0 }
  0xee   : > { %v372_v7 = vmul.f32 0.25, %v366_v5  ;;  %v620_v8 = vpop.f32.mrb[1].mxu0 }
  0xef   : > { %v369_v9 = vpop.f32.mrb[2].mxu0 }
  0xf0   : > { %v621_v10 = vpop.f32.mrb[3].mxu0  ;;  %v380_v11 = vadd.f32 %v608_v6, %v372_v7 }
  0xf2   : > { %v383_v12 = vsel %vm382_vm3, %v380_v11, -inf }
  0xf3   : > { %384 = vmax.xlane.f32.xlu0 %v383_v12 }
 0x180   : > { %v385_v15 = vpop.xlane.xlu0 %384 }
 0x181   : > { %v386_v16 = vmax.f32 %v381_v14, %v385_v15 }
 0x183   : > { %v387_v17 = vsub.f32 %v381_v14, %v386_v16  ;;  %463 = vst.msk [vmem:[#allocation2] sm:$0xff] %vm317_vm2, %v386_v16  ;;  %392 = vperm.xlu0 %656, %v386_v16  }
 0x185   : > { %v388_v26 = vmul.f32 1.442695, %v387_v17 }
 0x202   : > { %v393_v20 = vpop.permute.xlu0 %392 }
 0x203   : > { %v395_v21 = vsub.f32 %v380_v11, %v393_v20 }
 0x205   : > { %v396_v22 = vmul.f32 1.442695, %v395_v21 }
 0x207   : > { %658 = vpow2.f32 %v396_v22 }
 0x208   : > { %660 = vpow2.f32 %v388_v26 }
 0x211   : > { %v659_v23 = vpop.eup %658 }
 0x212   : > { %v400_v24 = vsel %vm382_vm3, %v659_v23, 0.0  ;;  %v413_v25 = vpack.c.bf16 %v659_v23, %v659_v23  ;;  %v661_v27 = vpop.eup %660 }
 0x213   : > { %401 = vadd.xlane.f32.xlu1 %v400_v24  ;;  %v399_v29 = vmul.f32 %v661_v27, %v398_v28 }
 0x214   : > { %625 = vmatmul.mubr.msk.bf16.vlgmr.msra.gmra.mrb[0].mxu1 %vm382_vm3, %v413_v25 }
 0x224   : > { %409 = vperm.xlu1 %657, %v661_v27  }
 0x2a0   : > { %v402_v30 = vpop.xlane.xlu1 %401 }
 0x2a1   : > { %v403_v31 = vadd.f32 %v402_v30, %v399_v29 }
 0x2a3   : > { %405 = vst.msk [vmem:[#allocation3] sm:$0xff] %vm317_vm2, %v403_v31 }
 0x2a4   : > { %v410_v35 = vpop.permute.xlu1 %409 }
 0x2a5   : > { %v412_v36 = vmul.f32 %v410_v35, %v406_v34 }
 0x2aa   : > { %v467_v32 = vld [vmem:[#allocation3] sm:$0xff] }
 0x2ab   : > { %662 = vrcp.f32 %v467_v32 }
 0x2b5   : > { %v663_v33 = vpop.eup %662 }
 0x2b6   : > { %472 = vperm.xlu1 %657, %v663_v33  }
 0x2e7   : > { %v455_v37 = vpop.f32.mrb[0].mxu1 }
 0x2e8   : > { %v461_v38 = vadd.f32 %v455_v37, %v412_v36  ;;  %v626_v39 = vpop.f32.mrb[1].mxu1 }
 0x2e9   : > { %v458_v40 = vpop.f32.mrb[2].mxu1 }
 0x2ea   : > { %462 = vst.msk [vmem:[#allocation4] sm:$0xff] %vm320_vm0, %v461_v38  ;;  %v627_v41 = vpop.f32.mrb[3].mxu1 }
 0x2f1   : > { %v469_v42 = vld [vmem:[#allocation4] sm:$0xff] }
 0x335   : > { %v473_v43 = vpop.permute.xlu1 %472 }
 0x336   : > { %v475_v44 = vmul.f32 %v473_v43, %v469_v42 }
 0x338   : > { %v476_v45 = vpack.c.bf16 %v475_v44, %v475_v44 }
 0x33a   : > { %478 = vst.msk [vmem:[%s311_s8] sm:$0xf] %vm477_vm5, %v476_v45 }
 0x33b PF: > { %s14_s17 = sadd.s32 1, %s686_s17   ;;  %s781_s15 = smov %s682_s16 }
 0x33c   : > { %p11_p5 = scmp.ge.s32.totalorder %s14_s17, 6   ;;  %s782_s16 = smov %s784_s18 }
 0x33e   :  { %13 = sbr.rel (!%p11_p5) target bundleno = 2 (0x2), region = 83 }

// kernel: text_model_forward.13
= control target key start
LH: loop header
LB: loop body
LE: loop exit
PB: predicated region body
PF: predicated region fallthrough
CT: control target
= control target key end

     0   :  { %vm27_vm0 = vcmask 261120   ;;  %vm81_vm1 = vcmask 257024   ;;  %s153_s0 = inlined_call_operand.vmem [shape: bf16[16,32], index: 0, kind: input, shape index: {}]   ;;  %s154_s1 = inlined_call_operand.vmem [shape: bf16[16,32], index: 1, kind: input, shape index: {}]   ;;  %s155_s2 = inlined_call_operand.vmem [shape: f32[1,32], index: 2, kind: input, shape index: {}]   ;;  %s156_s3 = inlined_call_operand.vmem [shape: f32[1,32], index: 3, kind: input, shape index: {}]   ;;  %s157_s4 = inlined_call_operand.vmem [shape: bf16[16,32], index: 4, kind: output, shape index: {}]  }
   0x1   :  { %v95_v0 = vld [vmem:[%s153_s0] sm:$0xff]  }
   0x2   :  { %v99_v1 = vld [vmem:[%s154_s1] sm:$0xff]   ;;  %v96_v2 = vunpack.c.l.bf16 %v95_v0  ;;  %v97_v4 = vunpack.c.h.bf16 %v95_v0 }
   0x3   :  { %v100_v3 = vunpack.c.l.bf16 %v99_v1  ;;  %v101_v5 = vunpack.c.h.bf16 %v99_v1  ;;  %v88_v27 = vld [vmem:[%s155_s2] ss:$0 sm:$0xff] }
   0x4   :  { %v89_v29 = vld [vmem:[%s156_s3] ss:$0 sm:$0xff] }
   0x5   :  { %v25_v6 = vadd.f32 %v100_v3, %v96_v2  ;;  %v26_v7 = vadd.f32 %v101_v5, %v97_v4 }
   0x7   :  { %v28_v8 = vsel %vm27_vm0, %v25_v6, 0.0  ;;  %v31_v9 = vsel %vm27_vm0, %v26_v7, 0.0 }
   0x8   :  { %29 = vadd.xlane.f32.xlu0 %v28_v8 }
   0xc   :  { %32 = vadd.xlane.f32.xlu0 %v31_v9 }
  0x95   :  { %v30_v10 = vpop.xlane.xlu0 %29 }
  0x96   :  { %v35_v11 = vmul.f32 0.03125, %v30_v10 }
  0x98   :  { %v37_v12 = vsub.f32 %v25_v6, %v35_v11 }
  0x99   :  { %v33_v13 = vpop.xlane.xlu0 %32 }
  0x9a   :  { %v36_v14 = vmul.f32 0.03125, %v33_v13  ;;  %v39_v15 = vmul.f32 %v37_v12, %v37_v12 }
  0x9c   :  { %v38_v16 = vsub.f32 %v26_v7, %v36_v14  ;;  %v41_v17 = vsel %vm27_vm0, %v39_v15, 0.0 }
  0x9d   :  { %42 = vadd.xlane.f32.xlu1 %v41_v17 }
  0x9e   :  { %v40_v18 = vmul.f32 %v38_v16, %v38_v16 }
  0xa0   :  { %v44_v19 = vsel %vm27_vm0, %v40_v18, 0.0 }
  0xa1   :  { %45 = vadd.xlane.f32.xlu1 %v44_v19 }
 0x12a   :  { %v43_v20 = vpop.xlane.xlu1 %42 }
 0x12b   :  { %v47_v21 = vmul.f32 0.03125, %v43_v20 }
 0x12d   :  { %v49_v22 = vadd.f32 1e-12, %v47_v21 }
 0x12e   :  { %v46_v23 = vpop.xlane.xlu1 %45 }
 0x12f   :  { %102 = vrsqrt.f32 %v49_v22  ;;  %v48_v24 = vmul.f32 0.03125, %v46_v23 }
 0x131   :  { %v50_v25 = vadd.f32 1e-12, %v48_v24 }
 0x133   :  { %104 = vrsqrt.f32 %v50_v25 }
 0x139   :  { %v103_v26 = vpop.eup %102 }
 0x13a   :  { %v53_v28 = vmul.f32 %v103_v26, %v37_v12 }
 0x13c   :  { %v62_v30 = vmul.f32 %v88_v27, %v53_v28 }
 0x13d   :  { %v105_v31 = vpop.eup %104 }
 0x13e   :  { %v71_v32 = vadd.f32 %v89_v29, %v62_v30  ;;  %v54_v33 = vmul.f32 %v105_v31, %v38_v16 }
 0x140   :  { %v92_v34 = vpack.c.bf16 %v71_v32, %v71_v32  ;;  %v63_v35 = vmul.f32 %v88_v27, %v54_v33 }
 0x142   :  { %82 = vst.msk [vmem:[%s157_s4] sm:$0xf] %vm81_vm1, %v92_v34  ;;  %v72_v36 = vadd.f32 %v89_v29, %v63_v35 }
 0x144   :  { %v93_v37 = vpack.c.bf16 %v72_v36, %v72_v36 }
 0x146   :  { %83 = vst.msk [vmem:[%s157_s4 + $0x4] sm:$0xf] %vm81_vm1, %v93_v37 }

// kernel: text_model_forward.17
= control target key start
LH: loop header
LB: loop body
LE: loop exit
PB: predicated region body
PF: predicated region fallthrough
CT: control target
= control target key end

     0   :  { %v286_v3 = vmov 0.0|0.0   ;;  %vm287_vm0 = vmmov 0   ;;  %v288_v6 = vmov 0.0   ;;  %s367_s0 = inlined_call_operand.vmem [shape: f32[2,32], index: 0, kind: input, shape index: {}]   ;;  %s368_s1 = inlined_call_operand.vmem [shape: f32[32,32], index: 1, kind: input, shape index: {}]   ;;  %s369_s2 = inlined_call_operand.vmem [shape: f32[1,32], index: 2, kind: input, shape index: {}]   ;;  %s370_s3 = inlined_call_operand.vmem [shape: f32[32,4], index: 3, kind: input, shape index: {}]   ;;  %s371_s4 = inlined_call_operand.vmem [shape: f32[1,4], index: 4, kind: input, shape index: {}]   ;;  %s372_s5 = inlined_call_operand.hbm [shape: f32[2,4], index: 5, kind: output, shape index: {}]  }
   0x1   :  { %v22_v0 = vld [vmem:[%s368_s1] sm:$0xff]  ;;  %v23_v1 = vld [vmem:[%s368_s1 + $0x8] sm:$0xff]  ;;  %v24_v2 = vld [vmem:[%s368_s1 + $0x10] sm:$0xff]  ;;  %244 = vmatprep.subr.bf16.mxu0 %v286_v3  ;;  %230 = vmatprep.mubr.msk.f32.mxu0 %vm287_vm0, %v288_v6 }
   0x2   :  { %v245_v4 = vpack.c.bf16 %v23_v1, %v22_v0  ;;  %v25_v5 = vld [vmem:[%s368_s1 + $0x18] sm:$0xff]  ;;  %250 = vmatprep.subr.bf16.mxu1 %v286_v3  ;;  %241 = vmatprep.mubr.msk.f32.mxu1 %vm287_vm0, %v288_v6 }
   0x3   :  { %10 = vsyncpa [#allocation3], 0  ;;  %v248_v7 = vpack.c.bf16 %v25_v5, %v24_v2  ;;  %v21_v8 = vld [vmem:[%s367_s0] sm:$0x3]  ;;  %vm33_vm1 = vcmask 261120   ;;  %v109_v10 = vld [vmem:[%s370_s3 + $0x8] sm:$0xff] }
   0x4   :  { %246 = vmatpush3.bf16.msra.mxu0 %v245_v4  ;;  %v108_v9 = vld [vmem:[%s370_s3] sm:$0xff]  ;;  %v110_v11 = vld [vmem:[%s370_s3 + $0x10] sm:$0xff]  ;;  %v111_v13 = vld [vmem:[%s370_s3 + $0x18] sm:$0xff]  ;;  %s289_s3 = smov [#allocation2]   ;;  %vm192_vm2 = vcmask 25600  }
   0x5   :  { %247 = vmatprep.subr.bf16.mxu0 %v286_v3  ;;  %v251_v12 = vpack.c.bf16 %v109_v10, %v108_v9  ;;  %v254_v14 = vpack.c.bf16 %v111_v13, %v110_v11  ;;  %v208_v15 = vld [vmem:[%s369_s2] ss:$0 sm:$0xff]  ;;  %s200_s13 = sshll.u32 %s289_s3, 4  ;;  %s201_s13 = int_to_ptr.vmem [resolvable:$true] %s200_s13 }
   0x6   :  { %v210_v20 = vld [vmem:[%s371_s4] ss:$0 sm:$0xff]  ;;  %s262_s2 = scalar_lea.vmem %s201_s13, 32  ;;  %p267_p1 = scmp.lt.s32.totalorder %s201_s13, %s201_s13 }
   0x7   :  { %252 = vmatpush3.bf16.msra.mxu1 %v251_v12  ;;  %p263_p0 = scmp.ne.s32.totalorder %s201_s13, %s262_s2  ;;  %p268_p2 = scmp.lt.s32.totalorder %s262_s2, %s262_s2 }
   0x8   :  { %249 = vmatpush3.bf16.msra.mxu0 %v248_v7  ;;  %253 = vmatprep.subr.bf16.mxu1 %v286_v3 }
   0x9   :  { %p269_p3 = por %p268_p2, %p267_p1 }
   0xb   :  { %231 = vmatmul.mubr.msk.f32.vlgmr.msra.gmra.mrb[0].mxu0 %vm33_vm1, %v21_v8  ;;  %255 = vmatpush3.bf16.msra.mxu1 %v254_v14  ;;  %p270_p4 = pnand %p269_p3, %p263_p0 }
  0xde   :  { %v103_v16 = vpop.f32.mrb[0].mxu0 }
  0xdf   :  { %v104_v17 = vadd.f32 %v208_v15, %v103_v16  ;;  %v232_v18 = vpop.f32.mrb[1].mxu0 }
  0xe1   :  { %260 = vtanh.f32 %v104_v17 }
  0xeb   :  { %v261_v19 = vpop.eup %260 }
  0xec   :  { %242 = vmatmul.mubr.msk.f32.vlgmr.msra.gmra.mrb[0].mxu1 %vm33_vm1, %v261_v19 }
 0x1bf   :  { %v188_v21 = vpop.f32.mrb[0].mxu1 }
 0x1c0   :  { %v189_v22 = vadd.f32 %v210_v20, %v188_v21  ;;  %v243_v23 = vpop.f32.mrb[1].mxu1 }
 0x1c2   :  { %193 = vst.msk [vmem:[#allocation2] sm:$0x3] %vm192_vm2, %v189_v22 }
 0x1c3   :  { %273 = shalt.err (!%p270_p4)
}
 0x1c4   :  { %s274_s16 = scalar_lea.hbm %s372_s5, 32 }
 0x1c5   :  { %p275_p5 = scmp.ne.s32.totalorder %s372_s5, %s274_s16  ;;  %p278_p6 = scmp.lt.u32.totalorder %s274_s16, %s372_s5 }
 0x1c7   :  { %p280_p7 = pnand %p278_p6, %p275_p5 }
 0x1c9   :  { %283 = shalt.err (!%p280_p7)
}
 0x1ca   :  { %203 = dma.vmem_to_hbm [thread:$0]  %s201_s13, 32, %s372_s5, [#allocation3]  }
 0x1cb   :  { %284 = dma.done.wait [#allocation3], 32  }
 0x1cc   :  { %285 = vsyncadd [#allocation3], 4294967264 }
 0x1cd   :  { %207 = vsyncpa [#allocation3], 1 }

// kernel: text_model_forward.15
= control target key start
LH: loop header
LB: loop body
LE: loop exit
PB: predicated region body
PF: predicated region fallthrough
CT: control target
= control target key end

     0   :  { %vm19_vm0 = vcmask 261120   ;;  %v177_v0 = vmov 0.0   ;;  %vm178_vm1 = vmmov 0   ;;  %vm63_vm2 = vcmask 523264   ;;  %s227_s1 = inlined_call_operand.vmem [shape: bf16[64,32], index: 1, kind: input, shape index: {}]   ;;  %s228_s0 = inlined_call_operand.vmem [shape: bf16[16,64], index: 0, kind: input, shape index: {}]   ;;  %s229_s2 = inlined_call_operand.vmem [shape: f32[1,32], index: 2, kind: input, shape index: {}]   ;;  %s230_s3 = inlined_call_operand.vmem [shape: bf16[16,32], index: 3, kind: output, shape index: {}]  }
   0x1   :  { %158 = vmatprep.subr.bf16.mxu0 %v177_v0  ;;  %v172_v1 = vld [vmem:[%s227_s1] sm:$0xff]   ;;  %166 = vmatprep.mubr.msk.bf16.mxu0 %vm178_vm1, %v177_v0  ;;  %20 = vst.msk [vmem:[#allocation2] sm:$0xff] %vm19_vm0, %v177_v0  ;;  %21 = vst.msk [vmem:[#allocation2 + $0x8] sm:$0xff] %vm19_vm0, %v177_v0  ;;  %v173_v2 = vld [vmem:[%s227_s1 + $0x8] sm:$0xff]   ;;  %vm135_vm3 = vcmask 257024  }
   0x2   :  { %159 = vmatpush3.bf16.msra.mxu0 %v172_v1  ;;  %v174_v3 = vld [vmem:[%s227_s1 + $0x10] sm:$0xff]   ;;  %v175_v4 = vld [vmem:[%s227_s1 + $0x18] sm:$0xff]   ;;  %v176_v5 = vld [vmem:[%s228_s0] sm:$0xff]  }
   0x3   :  { %160 = vmatprep.subr.bf16.mxu0 %v177_v0  ;;  %v148_v14 = vld [vmem:[%s229_s2] ss:$0 sm:$0xff] }
   0x6   :  { %161 = vmatpush3.bf16.msra.mxu0 %v173_v2 }
   0x7   :  { %162 = vmatprep.subr.bf16.mxu0 %v177_v0 }
   0x8   :  { %v22_v6 = vld [vmem:[#allocation2] sm:$0xff]  ;;  %v23_v8 = vld [vmem:[#allocation2 + $0x8] sm:$0xff] }
   0xa   :  { %163 = vmatpush3.bf16.msra.mxu0 %v174_v3 }
   0xb   :  { %164 = vmatprep.subr.bf16.mxu0 %v177_v0 }
   0xe   :  { %165 = vmatpush3.bf16.msra.mxu0 %v175_v4 }
  0x11   :  { %167 = vmatmul.mubr.msk.bf16.vlgmr.msra.gmra.mrb[0].mxu0 %vm63_vm2, %v176_v5 }
  0xe4   :  { %v101_v7 = vpop.f32.mrb[0].mxu0 }
  0xe5   :  { %v108_v9 = vadd.f32 %v101_v7, %v22_v6  ;;  %v168_v10 = vpop.f32.mrb[1].mxu0 }
  0xe6   :  { %v104_v11 = vpop.f32.mrb[2].mxu0 }
  0xe7   :  { %111 = vst.msk [vmem:[#allocation2] sm:$0xff] %vm19_vm0, %v108_v9  ;;  %v109_v12 = vadd.f32 %v104_v11, %v23_v8  ;;  %v169_v13 = vpop.f32.mrb[3].mxu0 }
  0xe9   :  { %112 = vst.msk [vmem:[#allocation2 + $0x8] sm:$0xff] %vm19_vm0, %v109_v12 }
  0xee   :  { %v116_v15 = vld [vmem:[#allocation2] sm:$0xff] }
  0xef   :  { %v125_v16 = vadd.f32 %v148_v14, %v116_v15 }
  0xf0   :  { %v117_v17 = vld [vmem:[#allocation2 + $0x8] sm:$0xff] }
  0xf1   :  { %v151_v18 = vpack.c.bf16 %v125_v16, %v125_v16  ;;  %v126_v19 = vadd.f32 %v148_v14, %v117_v17 }
  0xf3   :  { %136 = vst.msk [vmem:[%s230_s3] sm:$0xf] %vm135_vm3, %v151_v18  ;;  %v152_v20 = vpack.c.bf16 %v126_v19, %v126_v19 }
  0xf5   :  { %137 = vst.msk [vmem:[%s230_s3 + $0x4] sm:$0xf] %vm135_vm3, %v152_v20 }

// kernel: text_model_forward.14
= control target key start
LH: loop header
LB: loop body
LE: loop exit
PB: predicated region body
PF: predicated region fallthrough
CT: control target
= control target key end

     0   :  { %vm19_vm0 = vcmask 523264   ;;  %v173_v0 = vmov 0.0   ;;  %vm174_vm1 = vmmov 0   ;;  %vm47_vm2 = vcmask 261120   ;;  %s217_s1 = inlined_call_operand.vmem [shape: bf16[32,64], index: 1, kind: input, shape index: {}]   ;;  %s218_s0 = inlined_call_operand.vmem [shape: bf16[16,32], index: 0, kind: input, shape index: {}]   ;;  %s219_s2 = inlined_call_operand.vmem [shape: f32[1,64], index: 2, kind: input, shape index: {}]   ;;  %s220_s3 = inlined_call_operand.vmem [shape: bf16[16,64], index: 3, kind: output, shape index: {}]  }
   0x1   :  { %156 = vmatprep.subr.bf16.mxu0 %v173_v0  ;;  %v166_v1 = vld [vmem:[%s217_s1] sm:$0xff]   ;;  %160 = vmatprep.mubr.msk.bf16.mxu0 %vm174_vm1, %v173_v0  ;;  %20 = vst.msk [vmem:[#allocation2] sm:$0xff] %vm19_vm0, %v173_v0  ;;  %21 = vst.msk [vmem:[#allocation2 + $0x8] sm:$0xff] %vm19_vm0, %v173_v0  ;;  %v167_v2 = vld [vmem:[%s217_s1 + $0x8] sm:$0xff]   ;;  %vm137_vm3 = vcmask 519168  }
   0x2   :  { %157 = vmatpush3.bf16.msra.mxu0 %v166_v1  ;;  %v168_v3 = vld [vmem:[%s218_s0] sm:$0xff]  }
   0x3   :  { %158 = vmatprep.subr.bf16.mxu0 %v173_v0  ;;  %v148_v12 = vld [vmem:[%s219_s2] ss:$0 sm:$0xff] }
   0x6   :  { %159 = vmatpush3.bf16.msra.mxu0 %v167_v2 }
   0x8   :  { %v22_v4 = vld [vmem:[#allocation2] sm:$0xff]  ;;  %v23_v6 = vld [vmem:[#allocation2 + $0x8] sm:$0xff] }
   0x9   :  { %161 = vmatmul.mubr.msk.bf16.vlgmr.msra.gmra.mrb[0].mxu0 %vm47_vm2, %v168_v3 }
  0xdc   :  { %v85_v5 = vpop.f32.mrb[0].mxu0 }
  0xdd   :  { %v92_v7 = vadd.f32 %v85_v5, %v22_v4  ;;  %v162_v8 = vpop.f32.mrb[1].mxu0 }
  0xde   :  { %v88_v9 = vpop.f32.mrb[2].mxu0 }
  0xdf   :  { %95 = vst.msk [vmem:[#allocation2] sm:$0xff] %vm19_vm0, %v92_v7  ;;  %v93_v10 = vadd.f32 %v88_v9, %v23_v6  ;;  %v163_v11 = vpop.f32.mrb[3].mxu0 }
  0xe1   :  { %96 = vst.msk [vmem:[#allocation2 + $0x8] sm:$0xff] %vm19_vm0, %v93_v10 }
  0xe6   :  { %v100_v13 = vld [vmem:[#allocation2] sm:$0xff] }
  0xe7   :  { %v109_v14 = vadd.f32 %v148_v12, %v100_v13 }
  0xe8   :  { %v101_v15 = vld [vmem:[#allocation2 + $0x8] sm:$0xff] }
  0xe9   :  { %v111_v16 = vmul.f32 %v109_v14, %v109_v14  ;;  %v110_v17 = vadd.f32 %v148_v12, %v101_v15 }
  0xeb   :  { %v113_v18 = vmul.f32 %v111_v16, %v109_v14  ;;  %v112_v19 = vmul.f32 %v110_v17, %v110_v17 }
  0xed   :  { %v115_v20 = vmul.f32 0.044715, %v113_v18  ;;  %v114_v21 = vmul.f32 %v112_v19, %v110_v17 }
  0xef   :  { %v117_v22 = vadd.f32 %v115_v20, %v109_v14  ;;  %v116_v23 = vmul.f32 0.044715, %v114_v21 }
  0xf1   :  { %v119_v24 = vmul.f32 0.7978846, %v117_v22  ;;  %v118_v25 = vadd.f32 %v116_v23, %v110_v17 }
  0xf3   :  { %169 = vtanh.f32 %v119_v24  ;;  %v120_v26 = vmul.f32 0.7978846, %v118_v25 }
  0xf5   :  { %171 = vtanh.f32 %v120_v26 }
  0xfd   :  { %v170_v27 = vpop.eup %169 }
  0xfe   :  { %v123_v28 = vadd.f32 1.0, %v170_v27 }
  0xff   :  { %v172_v29 = vpop.eup %171 }
 0x100   :  { %v125_v30 = vmul.f32 0.5, %v123_v28  ;;  %v124_v31 = vadd.f32 1.0, %v172_v29 }
 0x102   :  { %v127_v32 = vmul.f32 %v125_v30, %v109_v14  ;;  %v126_v33 = vmul.f32 0.5, %v124_v31 }
 0x104   :  { %v151_v34 = vpack.c.bf16 %v127_v32, %v127_v32  ;;  %v128_v35 = vmul.f32 %v126_v33, %v110_v17 }
 0x106   :  { %138 = vst.msk [vmem:[%s220_s3] sm:$0xf] %vm137_vm3, %v151_v34  ;;  %v152_v36 = vpack.c.bf16 %v128_v35, %v128_v35 }
 0x108   :  { %139 = vst.msk [vmem:[%s220_s3 + $0x4] sm:$0xf] %vm137_vm3, %v152_v36 }

</bundles_post_ra>
